<compile_context>
chip_gen: v6e
topology: v6e:2x2x1
jax: 0.10.0
libtpu: 0.0.40
codegen_flags: <defaults>
</compile_context>

<pallas_src>
import functools

import jax
import jax.numpy as jnp
import numpy as np
from jax import lax
from jax.experimental import pallas as pl
from jax.experimental.pallas import tpu as pltpu


def _linear_bias_nchw_kernel(x_ref, w_ref, b_ref, o_ref, acc_ref, *, tk, mxu_dtype):
    # x_ref:   (Mp, Cin)  full-K activation slab for one batch element (resident)
    # w_ref:   (tn, tk)   torch-layout weight tile (Cout rows, K columns)
    # b_ref:   (tn, 1)    bias slice, broadcast along Mp
    # o_ref:   (tn, Mp)   transposed output tile -> NCHW layout for free
    # acc_ref: (tn, Mp)   f32 accumulator scratch (resident across the K axis)
    k = pl.program_id(2)

    @pl.when(k == 0)
    def _():
        acc_ref[...] = jnp.zeros_like(acc_ref)

    k_start = pl.multiple_of(k * tk, tk)
    x_blk = x_ref[:, pl.ds(k_start, tk)]                      # (Mp, tk)

    acc_ref[...] += lax.dot_general(
        w_ref[...].astype(mxu_dtype), x_blk.astype(mxu_dtype),
        dimension_numbers=(((1,), (1,)), ((), ())),           # contract K with K
        preferred_element_type=jnp.float32,
    )

    @pl.when(k == pl.num_programs(2) - 1)
    def _():
        o_ref[...] = (acc_ref[...] + b_ref[...]).astype(o_ref.dtype)


def linear_permute(x, weight, bias, *, tn=None, tk=None, mxu_dtype=jnp.bfloat16):
    """Equivalent of torch: permute(Linear(x), [0, 3, 1, 2]).

    x:      (B, H, W, Cin)   float32
    weight: (Cout, Cin)      float32 (torch layout, used as-is)
    bias:   (Cout,)          float32
    returns (B, Cout, H, W)  float32
    """
    B, H, W, Cin = x.shape
    Cout, cin_w = weight.shape
    assert cin_w == Cin
    Mhw = H * W
    Mp = ((Mhw + 127) // 128) * 128   # lane-dense output dim, 8-aligned sublanes

    # 256-wide N tiles fill the 256x256 MXU on v6e/v7x and give exactly two
    # 'parallel' output tiles for Cout=512 (one per TensorCore on v7x).
    if tn is None:
        tn = 256 if Cout % 256 == 0 else (128 if Cout % 128 == 0 else Cout)
    assert Cout % tn == 0, "Cout must be a multiple of the lane tile"
    # K chunk of the weight stream; 512 -> 4 pipeline steps for Cin=2048.
    if tk is None:
        tk = 512 if Cin % 512 == 0 else (256 if Cin % 256 == 0 else Cin)
    assert Cin % tk == 0, "Cin must be a multiple of the K tile"

    nj = Cout // tn
    nk = Cin // tk

    x3d = x.reshape(B, Mhw, Cin)                   # (B, M, K)
    if Mp != Mhw:
        # Zero-pad spatial rows; padded output columns hold only bias and are
        # sliced off below.
        x3d = jnp.pad(x3d, ((0, 0), (0, Mp - Mhw), (0, 0)))
    b2d = bias.reshape(Cout, 1)                    # (N, 1)

    kernel = functools.partial(_linear_bias_nchw_kernel, tk=tk, mxu_dtype=mxu_dtype)

    flops = 2 * B * Mp * Cin * Cout
    bytes_accessed = 4 * (B * Mp * Cin + Cin * Cout + Cout + B * Cout * Mp)

    # NOTE: with B > 1 in production, reorder so the Cout-tile axis is outer
    # (or block several batch elements per step) to avoid re-streaming the
    # weight per batch element; irrelevant at B == 1.
    y_t = pl.pallas_call(
        kernel,
        out_shape=jax.ShapeDtypeStruct((B, Cout, Mp), x.dtype),
        grid_spec=pltpu.PrefetchScalarGridSpec(
            num_scalar_prefetch=0,
            grid=(B, nj, nk),
            in_specs=[
                # full-K activation slab, constant block index over (j, k):
                # DMA'd once per batch element, sliced in-kernel with pl.ds.
                pl.BlockSpec((None, Mp, Cin), lambda b, j, k: (b, 0, 0)),
                # streaming (tn, tk) weight tile in torch layout.
                pl.BlockSpec((tn, tk), lambda b, j, k: (j, k)),
                # matching bias slice.
                pl.BlockSpec((tn, 1), lambda b, j, k: (j, 0)),
            ],
            out_specs=pl.BlockSpec((None, tn, Mp), lambda b, j, k: (b, j, 0)),
            scratch_shapes=[pltpu.VMEM((tn, Mp), jnp.float32)],
        ),
        compiler_params=pltpu.CompilerParams(
            dimension_semantics=("parallel", "parallel", "arbitrary"),
        ),
        cost_estimate=pl.CostEstimate(
            flops=flops, bytes_accessed=bytes_accessed, transcendentals=0),
    )(x3d, weight, b2d)

    if Mp != Mhw:
        y_t = y_t[:, :, :Mhw]
    # (B, Cout, H*W) -> (B, Cout, H, W): pure reshape, no data movement.
    return y_t.reshape(B, Cout, H, W)


if __name__ == "__main__":
    key = jax.random.PRNGKey(0)
    kx, kw, kb = jax.random.split(key, 3)

    # Shapes implied by the PyTorch module: x156 = (1, 14, 14, 2048), Linear(2048, 512).
    B, H, W, Cin, Cout = 1, 14, 14, 2048, 512
    x = jax.random.normal(kx, (B, H, W, Cin), dtype=jnp.float32)
    weight = jax.random.normal(kw, (Cout, Cin), dtype=jnp.float32) * 0.02
    bias = jax.random.normal(kb, (Cout,), dtype=jnp.float32) * 0.02

    fn = jax.jit(linear_permute)
    out = jax.block_until_ready(fn(x, weight, bias))

    # Plain-JAX reference (Linear then permute to NCHW).
    ref = jnp.transpose(jnp.einsum("bhwc,oc->bhwo", x, weight) + bias, (0, 3, 1, 2))
    # Tolerance loosened for in-kernel bf16 operands with f32 accumulation.
    np.testing.assert_allclose(np.asarray(out), np.asarray(ref), rtol=2e-2, atol=2e-2)
    assert out.shape == (B, Cout, H, W)

    print("KERNEL_OK")
</pallas_src>

<mosaic_0001>
module attributes {stable_mosaic.version = 11 : i64} {
  func.func @_linear_bias_nchw_kernel(%arg0: i32, %arg1: i32, %arg2: i32, %arg3: memref<1x256x2048xf32, #tpu.memory_space<vmem>>, %arg4: memref<256x512xf32, #tpu.memory_space<vmem>>, %arg5: memref<256x1xf32, #tpu.memory_space<vmem>>, %arg6: memref<1x256x256xf32, #tpu.memory_space<vmem>>, %arg7: memref<256x256xf32, #tpu.memory_space<vmem>>) attributes {dimension_semantics = [#tpu.dimension_semantics<parallel>, #tpu.dimension_semantics<parallel>, #tpu.dimension_semantics<arbitrary>], iteration_bounds = array<i64: 1, 2, 4>, scalar_prefetch = 0 : i64, scratch_operands = 1 : i64, tpu.core_type = #tpu.core_type<tc>, window_params = [{transform_indices = @transform_0, window_bounds = array<i64: 1, 256, 2048>}, {transform_indices = @transform_1, window_bounds = array<i64: 256, 512>}, {transform_indices = @transform_2, window_bounds = array<i64: 256, 1>}, {transform_indices = @transform_3, window_bounds = array<i64: 1, 256, 256>}]} {
    %c0_i32 = arith.constant 0 : i32
    %0 = arith.cmpi eq, %arg2, %c0_i32 : i32
    %1 = arith.extui %0 : i1 to i32
    %c0_i32_0 = arith.constant 0 : i32
    %2 = arith.cmpi ne, %1, %c0_i32_0 : i32
    scf.if %2 {
      %cst_9 = arith.constant 0.000000e+00 : f32
      %18 = vector.broadcast %cst_9 : f32 to vector<256x256xf32>
      %c0_10 = arith.constant 0 : index
      %c0_11 = arith.constant 0 : index
      %19 = vector.load %arg7[%c0_10, %c0_11] : memref<256x256xf32, #tpu.memory_space<vmem>>, vector<256x256xf32>
      tpu.vector_store %arg7[%c0_10, %c0_11], %18 {strides = array<i32>} : memref<256x256xf32, #tpu.memory_space<vmem>>, vector<256x256xf32>,
    } else {
    }
    %c512_i32 = arith.constant 512 : i32
    %3 = arith.muli %arg2, %c512_i32 : i32
    %4 = tpu.assume_multiple %3, 512 : i32
    %c0 = arith.constant 0 : index
    %c0_1 = arith.constant 0 : index
    %5 = arith.index_cast %4 : i32 to index
    %6 = vector.load %arg3[%c0, %c0_1, %5] : memref<1x256x2048xf32, #tpu.memory_space<vmem>>, vector<1x256x512xf32>
    %7 = vector.shape_cast %6 : vector<1x256x512xf32> to vector<256x512xf32>
    %c0_2 = arith.constant 0 : index
    %c0_3 = arith.constant 0 : index
    %8 = vector.load %arg7[%c0_2, %c0_3] : memref<256x256xf32, #tpu.memory_space<vmem>>, vector<256x256xf32>
    %c0_4 = arith.constant 0 : index
    %c0_5 = arith.constant 0 : index
    %9 = vector.load %arg4[%c0_4, %c0_5] : memref<256x512xf32, #tpu.memory_space<vmem>>, vector<256x512xf32>
    %10 = arith.truncf %9 : vector<256x512xf32> to vector<256x512xbf16>
    %11 = arith.truncf %7 : vector<256x512xf32> to vector<256x512xbf16>
    %cst = arith.constant dense<0.000000e+00> : vector<256x256xf32>
    %12 = tpu.matmul %10, %11, %cst {dimension_numbers = #tpu.dot_dimension_numbers<[1], [1], [0], [0], [0, 0, 1, 0], [], []>} : vector<256x512xbf16>, vector<256x512xbf16>, vector<256x256xf32> -> vector<256x256xf32>
    %13 = arith.addf %8, %12 : vector<256x256xf32>
    %c0_6 = arith.constant 0 : index
    %c0_7 = arith.constant 0 : index
    %14 = vector.load %arg7[%c0_6, %c0_7] : memref<256x256xf32, #tpu.memory_space<vmem>>, vector<256x256xf32>
    tpu.vector_store %arg7[%c0_6, %c0_7], %13 {strides = array<i32>} : memref<256x256xf32, #tpu.memory_space<vmem>>, vector<256x256xf32>,
    %c3_i32 = arith.constant 3 : i32
    %15 = arith.cmpi eq, %arg2, %c3_i32 : i32
    %16 = arith.extui %15 : i1 to i32
    %c0_i32_8 = arith.constant 0 : i32
    %17 = arith.cmpi ne, %16, %c0_i32_8 : i32
    scf.if %17 {
      %c0_9 = arith.constant 0 : index
      %c0_10 = arith.constant 0 : index
      %18 = vector.load %arg7[%c0_9, %c0_10] : memref<256x256xf32, #tpu.memory_space<vmem>>, vector<256x256xf32>
      %c0_11 = arith.constant 0 : index
      %c0_12 = arith.constant 0 : index
      %19 = vector.load %arg5[%c0_11, %c0_12] : memref<256x1xf32, #tpu.memory_space<vmem>>, vector<256x1xf32>
      %20 = vector.broadcast %19 : vector<256x1xf32> to vector<256x256xf32>
      %21 = arith.addf %18, %20 : vector<256x256xf32>
      %c0_13 = arith.constant 0 : index
      %c0_14 = arith.constant 0 : index
      %c0_15 = arith.constant 0 : index
      %22 = vector.load %arg6[%c0_13, %c0_14, %c0_15] : memref<1x256x256xf32, #tpu.memory_space<vmem>>, vector<1x256x256xf32>
      %23 = vector.shape_cast %22 : vector<1x256x256xf32> to vector<256x256xf32>
      %24 = vector.shape_cast %21 : vector<256x256xf32> to vector<1x256x256xf32>
      tpu.vector_store %arg6[%c0_13, %c0_14, %c0_15], %24 {strides = array<i32>} : memref<1x256x256xf32, #tpu.memory_space<vmem>>, vector<1x256x256xf32>,
    } else {
    }
    return
  }
  func.func @transform_0(%arg0: i32, %arg1: i32, %arg2: i32) -> (i32, i32, i32) {
    %c0_i32 = arith.constant 0 : i32
    %c0_i32_0 = arith.constant 0 : i32
    %c0_i32_1 = arith.constant 0 : i32
    return %arg0, %c0_i32, %c0_i32_0 : i32, i32, i32
  }
  func.func @transform_1(%arg0: i32, %arg1: i32, %arg2: i32) -> (i32, i32) {
    %c0_i32 = arith.constant 0 : i32
    return %arg1, %arg2 : i32, i32
  }
  func.func @transform_2(%arg0: i32, %arg1: i32, %arg2: i32) -> (i32, i32) {
    %c0_i32 = arith.constant 0 : i32
    %c0_i32_0 = arith.constant 0 : i32
    return %arg1, %c0_i32 : i32, i32
  }
  func.func @transform_3(%arg0: i32, %arg1: i32, %arg2: i32) -> (i32, i32, i32) {
    %c0_i32 = arith.constant 0 : i32
    %c0_i32_0 = arith.constant 0 : i32
    return %arg0, %arg1, %c0_i32 : i32, i32, i32
  }
}

</mosaic_0001>

<bundles_post_ra>
// kernel: linear_permute.1
= control target key start
LH: loop header
LB: loop body
LE: loop exit
PB: predicated region body
PF: predicated region fallthrough
CT: control target
= control target key end

     0   :  { %s2243_s12 = smov 0   ;;  %s2245_s13 = smov 0   ;;  %s3024_s0 = inlined_call_operand.vmem [shape: f32[1,256,2048], index: 0, kind: input, shape index: {}]   ;;  %s3025_s1 = inlined_call_operand.vmem [shape: f32[512,2048], index: 1, kind: input, shape index: {}]   ;;  %s3026_s2 = inlined_call_operand.vmem [shape: f32[512,1], index: 2, kind: input, shape index: {}]   ;;  %s3027_s3 = inlined_call_operand.vmem [shape: f32[1,512,256], index: 3, kind: output, shape index: {}]  }
   0x1   :  { %s2247_s14 = smov 0   ;;  %s2249_s15 = smov 0  }
   0x2   :  { %s2251_s16 = smov 0   ;;  %s2253_s17 = smov 0  }
   0x3   :  { %s2255_s18 = smov 0  }
   0x4 LB: > { %s25_s19 = sadd.s32 1, %s2211_s16  ;;  %s28_s20 = sadd.s32 1, %s2215_s17  ;;  %s2219_s18 = sphi %s2255_s18, %s13_s18   ;;  %s2215_s17 = sphi %s2253_s17, %s3033_s17   ;;  %s2211_s16 = sphi %s2251_s16, %s3032_s16   ;;  %s2207_s15 = sphi %s2249_s15, %s3031_s15   ;;  %s2203_s14 = sphi %s2247_s14, %s3030_s14   ;;  %s2199_s13 = sphi %s2245_s13, %s3029_s13   ;;  %s2195_s12 = sphi %s2243_s12, %s3028_s12  }
   0x5   : > { %p26_p0 = scmp.ge.s32.totalorder %s25_s19, 4  ;;  %p74_p1 = scmp.ne.s32.totalorder %s2199_s13, %s2195_s12 }
   0x6   : > { %p75_p2 = scmp.eq.s32.totalorder %s2219_s18, 0  ;;  %s67_s24 = sadd.s32 1, %s2199_s13 }
   0x7   : > { %s3035_s19 = smov (%p26_p0, %s25_s19), 0  ;;  %s3037_s20 = smov (!%p26_p0, %s28_s20), %s2215_s17 }
   0x8   : > { %p76_p3 = por %p75_p2, %p74_p1  ;;  %p30_p4 = scmp.ge.s32.totalorder %s3037_s20, 2 }
   0x9   : > { %s63_s21 = ssub.s32 %s2211_s16, %s3035_s19  ;;  %p2084_p6 = scmp.ge.s32.totalorder %s2219_s18, 8 }
   0xa   : > { %s3039_s20 = smov (%p30_p4, %s3037_s20), 0 }
   0xb   : > { %s62_s22 = ssub.s32 %s2215_s17, %s3039_s20  ;;  %162 = sbr.rel (%p2084_p6) target bundleno = 87 (0x57), region = 20 }
   0xc   : > { %s64_s23 = sor.u32 %s63_s21, %s62_s22 }
   0xd   : > { %p65_p5 = scmp.eq.s32.totalorder %s64_s23, 0 }
   0xf   : > { %s2294_s25 = scalar_select %p65_p5, %s2199_s13, %s67_s24  }
  0x10   : > { %165 = sbr.rel (!%p76_p3) target bundleno = 87 (0x57), region = 24  ;;  %s167_s26 = sand.u32 (%p76_p3), 1, %s2199_s13  }
  0x11   : > { %s2087_s27 = sshll.u32 (%p76_p3), %s2211_s16, 2  ;;  %s2085_s28 = sshll.u32 (%p76_p3), %s167_s26, 10 }
  0x12   : > { %s2103_s29 = sshll.u32 (%p76_p3), %s2215_s17, 9  ;;  %s2308_s8 = scalar_lea.vmem (%p76_p3), [#allocation3], %s2085_s28 }
  0x13   : > { %s173_s30 = sadd.s32 (%p76_p3), %s2103_s29, %s2087_s27 }
  0x14   : > { %s2089_s4 = sshll.u32 (%p76_p3), %s173_s30, 3 }
  0x15   : > { %s2303_s7 = scalar_lea.vmem %s3025_s1, %s2089_s4 }
  0x16   : > { %v188_v0 = vld [vmem:[%s2303_s7] sm:$0xff]  ;;  %v190_v1 = vld [vmem:[%s2303_s7 + $0x8] sm:$0xff]  ;;  %v192_v2 = vld [vmem:[%s2303_s7 + $0x10] sm:$0xff] }
  0x17   : > { %189 = vst [vmem:[%s2308_s8] sm:$0xff] %v188_v0  ;;  %191 = vst [vmem:[%s2308_s8 + $0x8] sm:$0xff] %v190_v1  ;;  %v194_v3 = vld [vmem:[%s2303_s7 + $0x18] sm:$0xff]  ;;  %v196_v4 = vld [vmem:[%s2303_s7 + $0x80] sm:$0xff] }
  0x18   : > { %193 = vst [vmem:[%s2308_s8 + $0x10] sm:$0xff] %v192_v2  ;;  %v198_v5 = vld [vmem:[%s2303_s7 + $0x88] sm:$0xff]  ;;  %195 = vst [vmem:[%s2308_s8 + $0x18] sm:$0xff] %v194_v3  ;;  %v200_v6 = vld [vmem:[%s2303_s7 + $0x90] sm:$0xff] }
  0x19   : > { %197 = vst [vmem:[%s2308_s8 + $0x20] sm:$0xff] %v196_v4  ;;  %199 = vst [vmem:[%s2308_s8 + $0x28] sm:$0xff] %v198_v5  ;;  %v202_v7 = vld [vmem:[%s2303_s7 + $0x98] sm:$0xff]  ;;  %v204_v8 = vld [vmem:[%s2303_s7 + $0x100] sm:$0xff] }
  0x1a   : > { %201 = vst [vmem:[%s2308_s8 + $0x30] sm:$0xff] %v200_v6  ;;  %203 = vst [vmem:[%s2308_s8 + $0x38] sm:$0xff] %v202_v7  ;;  %v206_v9 = vld [vmem:[%s2303_s7 + $0x108] sm:$0xff]  ;;  %v208_v10 = vld [vmem:[%s2303_s7 + $0x110] sm:$0xff] }
  0x1b   : > { %205 = vst [vmem:[%s2308_s8 + $0x40] sm:$0xff] %v204_v8  ;;  %v210_v11 = vld [vmem:[%s2303_s7 + $0x118] sm:$0xff]  ;;  %207 = vst [vmem:[%s2308_s8 + $0x48] sm:$0xff] %v206_v9  ;;  %v212_v12 = vld [vmem:[%s2303_s7 + $0x180] sm:$0xff] }
  0x1c   : > { %209 = vst [vmem:[%s2308_s8 + $0x50] sm:$0xff] %v208_v10  ;;  %211 = vst [vmem:[%s2308_s8 + $0x58] sm:$0xff] %v210_v11  ;;  %v214_v13 = vld [vmem:[%s2303_s7 + $0x188] sm:$0xff]  ;;  %v216_v14 = vld [vmem:[%s2303_s7 + $0x190] sm:$0xff] }
  0x1d   : > { %213 = vst [vmem:[%s2308_s8 + $0x60] sm:$0xff] %v212_v12  ;;  %215 = vst [vmem:[%s2308_s8 + $0x68] sm:$0xff] %v214_v13  ;;  %v218_v15 = vld [vmem:[%s2303_s7 + $0x198] sm:$0xff]  ;;  %v220_v16 = vld [vmem:[%s2303_s7 + $0x200] sm:$0xff] }
  0x1e   : > { %217 = vst [vmem:[%s2308_s8 + $0x70] sm:$0xff] %v216_v14  ;;  %v222_v17 = vld [vmem:[%s2303_s7 + $0x208] sm:$0xff]  ;;  %219 = vst [vmem:[%s2308_s8 + $0x78] sm:$0xff] %v218_v15  ;;  %v224_v18 = vld [vmem:[%s2303_s7 + $0x210] sm:$0xff] }
  0x1f   : > { %221 = vst [vmem:[%s2308_s8 + $0x80] sm:$0xff] %v220_v16  ;;  %223 = vst [vmem:[%s2308_s8 + $0x88] sm:$0xff] %v222_v17  ;;  %v226_v19 = vld [vmem:[%s2303_s7 + $0x218] sm:$0xff]  ;;  %v228_v20 = vld [vmem:[%s2303_s7 + $0x280] sm:$0xff] }
  0x20   : > { %225 = vst [vmem:[%s2308_s8 + $0x90] sm:$0xff] %v224_v18  ;;  %227 = vst [vmem:[%s2308_s8 + $0x98] sm:$0xff] %v226_v19  ;;  %v230_v21 = vld [vmem:[%s2303_s7 + $0x288] sm:$0xff]  ;;  %v232_v22 = vld [vmem:[%s2303_s7 + $0x290] sm:$0xff] }
  0x21   : > { %229 = vst [vmem:[%s2308_s8 + $0xa0] sm:$0xff] %v228_v20  ;;  %v234_v23 = vld [vmem:[%s2303_s7 + $0x298] sm:$0xff]  ;;  %231 = vst [vmem:[%s2308_s8 + $0xa8] sm:$0xff] %v230_v21  ;;  %v236_v24 = vld [vmem:[%s2303_s7 + $0x300] sm:$0xff] }
  0x22   : > { %233 = vst [vmem:[%s2308_s8 + $0xb0] sm:$0xff] %v232_v22  ;;  %235 = vst [vmem:[%s2308_s8 + $0xb8] sm:$0xff] %v234_v23  ;;  %v238_v25 = vld [vmem:[%s2303_s7 + $0x308] sm:$0xff]  ;;  %v240_v26 = vld [vmem:[%s2303_s7 + $0x310] sm:$0xff] }
  0x23   : > { %237 = vst [vmem:[%s2308_s8 + $0xc0] sm:$0xff] %v236_v24  ;;  %239 = vst [vmem:[%s2308_s8 + $0xc8] sm:$0xff] %v238_v25  ;;  %v242_v27 = vld [vmem:[%s2303_s7 + $0x318] sm:$0xff]  ;;  %v244_v28 = vld [vmem:[%s2303_s7 + $0x380] sm:$0xff] }
  0x24   : > { %241 = vst [vmem:[%s2308_s8 + $0xd0] sm:$0xff] %v240_v26  ;;  %v246_v29 = vld [vmem:[%s2303_s7 + $0x388] sm:$0xff]  ;;  %243 = vst [vmem:[%s2308_s8 + $0xd8] sm:$0xff] %v242_v27  ;;  %v248_v30 = vld [vmem:[%s2303_s7 + $0x390] sm:$0xff] }
  0x25   : > { %245 = vst [vmem:[%s2308_s8 + $0xe0] sm:$0xff] %v244_v28  ;;  %247 = vst [vmem:[%s2308_s8 + $0xe8] sm:$0xff] %v246_v29  ;;  %v250_v31 = vld [vmem:[%s2303_s7 + $0x398] sm:$0xff]  ;;  %v252_v32 = vld [vmem:[%s2303_s7 + $0x400] sm:$0xff] }
  0x26   : > { %249 = vst [vmem:[%s2308_s8 + $0xf0] sm:$0xff] %v248_v30  ;;  %251 = vst [vmem:[%s2308_s8 + $0xf8] sm:$0xff] %v250_v31  ;;  %v254_v33 = vld [vmem:[%s2303_s7 + $0x408] sm:$0xff]  ;;  %v256_v34 = vld [vmem:[%s2303_s7 + $0x410] sm:$0xff] }
  0x27   : > { %253 = vst [vmem:[%s2308_s8 + $0x100] sm:$0xff] %v252_v32  ;;  %v258_v35 = vld [vmem:[%s2303_s7 + $0x418] sm:$0xff]  ;;  %255 = vst [vmem:[%s2308_s8 + $0x108] sm:$0xff] %v254_v33  ;;  %v260_v36 = vld [vmem:[%s2303_s7 + $0x480] sm:$0xff] }
  0x28   : > { %257 = vst [vmem:[%s2308_s8 + $0x110] sm:$0xff] %v256_v34  ;;  %259 = vst [vmem:[%s2308_s8 + $0x118] sm:$0xff] %v258_v35  ;;  %v262_v37 = vld [vmem:[%s2303_s7 + $0x488] sm:$0xff]  ;;  %v264_v38 = vld [vmem:[%s2303_s7 + $0x490] sm:$0xff] }
  0x29   : > { %261 = vst [vmem:[%s2308_s8 + $0x120] sm:$0xff] %v260_v36  ;;  %263 = vst [vmem:[%s2308_s8 + $0x128] sm:$0xff] %v262_v37  ;;  %v266_v39 = vld [vmem:[%s2303_s7 + $0x498] sm:$0xff]  ;;  %v268_v40 = vld [vmem:[%s2303_s7 + $0x500] sm:$0xff] }
  0x2a   : > { %265 = vst [vmem:[%s2308_s8 + $0x130] sm:$0xff] %v264_v38  ;;  %v270_v41 = vld [vmem:[%s2303_s7 + $0x508] sm:$0xff]  ;;  %267 = vst [vmem:[%s2308_s8 + $0x138] sm:$0xff] %v266_v39  ;;  %v272_v42 = vld [vmem:[%s2303_s7 + $0x510] sm:$0xff] }
  0x2b   : > { %269 = vst [vmem:[%s2308_s8 + $0x140] sm:$0xff] %v268_v40  ;;  %271 = vst [vmem:[%s2308_s8 + $0x148] sm:$0xff] %v270_v41  ;;  %v274_v43 = vld [vmem:[%s2303_s7 + $0x518] sm:$0xff]  ;;  %v276_v44 = vld [vmem:[%s2303_s7 + $0x580] sm:$0xff] }
  0x2c   : > { %273 = vst [vmem:[%s2308_s8 + $0x150] sm:$0xff] %v272_v42  ;;  %275 = vst [vmem:[%s2308_s8 + $0x158] sm:$0xff] %v274_v43  ;;  %v278_v45 = vld [vmem:[%s2303_s7 + $0x588] sm:$0xff]  ;;  %v280_v46 = vld [vmem:[%s2303_s7 + $0x590] sm:$0xff] }
  0x2d   : > { %277 = vst [vmem:[%s2308_s8 + $0x160] sm:$0xff] %v276_v44  ;;  %v282_v47 = vld [vmem:[%s2303_s7 + $0x598] sm:$0xff]  ;;  %279 = vst [vmem:[%s2308_s8 + $0x168] sm:$0xff] %v278_v45  ;;  %v284_v48 = vld [vmem:[%s2303_s7 + $0x600] sm:$0xff] }
  0x2e   : > { %281 = vst [vmem:[%s2308_s8 + $0x170] sm:$0xff] %v280_v46  ;;  %283 = vst [vmem:[%s2308_s8 + $0x178] sm:$0xff] %v282_v47  ;;  %v286_v49 = vld [vmem:[%s2303_s7 + $0x608] sm:$0xff]  ;;  %v288_v50 = vld [vmem:[%s2303_s7 + $0x610] sm:$0xff] }
  0x2f   : > { %285 = vst [vmem:[%s2308_s8 + $0x180] sm:$0xff] %v284_v48  ;;  %287 = vst [vmem:[%s2308_s8 + $0x188] sm:$0xff] %v286_v49  ;;  %v290_v51 = vld [vmem:[%s2303_s7 + $0x618] sm:$0xff]  ;;  %v292_v52 = vld [vmem:[%s2303_s7 + $0x680] sm:$0xff] }
  0x30   : > { %289 = vst [vmem:[%s2308_s8 + $0x190] sm:$0xff] %v288_v50  ;;  %v294_v53 = vld [vmem:[%s2303_s7 + $0x688] sm:$0xff]  ;;  %291 = vst [vmem:[%s2308_s8 + $0x198] sm:$0xff] %v290_v51  ;;  %v296_v54 = vld [vmem:[%s2303_s7 + $0x690] sm:$0xff] }
  0x31   : > { %293 = vst [vmem:[%s2308_s8 + $0x1a0] sm:$0xff] %v292_v52  ;;  %295 = vst [vmem:[%s2308_s8 + $0x1a8] sm:$0xff] %v294_v53  ;;  %v298_v55 = vld [vmem:[%s2303_s7 + $0x698] sm:$0xff]  ;;  %v300_v56 = vld [vmem:[%s2303_s7 + $0x700] sm:$0xff] }
  0x32   : > { %297 = vst [vmem:[%s2308_s8 + $0x1b0] sm:$0xff] %v296_v54  ;;  %299 = vst [vmem:[%s2308_s8 + $0x1b8] sm:$0xff] %v298_v55  ;;  %v302_v57 = vld [vmem:[%s2303_s7 + $0x708] sm:$0xff]  ;;  %v304_v58 = vld [vmem:[%s2303_s7 + $0x710] sm:$0xff] }
  0x33   : > { %301 = vst [vmem:[%s2308_s8 + $0x1c0] sm:$0xff] %v300_v56  ;;  %v306_v59 = vld [vmem:[%s2303_s7 + $0x718] sm:$0xff]  ;;  %303 = vst [vmem:[%s2308_s8 + $0x1c8] sm:$0xff] %v302_v57  ;;  %v308_v60 = vld [vmem:[%s2303_s7 + $0x780] sm:$0xff] }
  0x34   : > { %305 = vst [vmem:[%s2308_s8 + $0x1d0] sm:$0xff] %v304_v58  ;;  %307 = vst [vmem:[%s2308_s8 + $0x1d8] sm:$0xff] %v306_v59  ;;  %v310_v61 = vld [vmem:[%s2303_s7 + $0x788] sm:$0xff]  ;;  %v312_v62 = vld [vmem:[%s2303_s7 + $0x790] sm:$0xff] }
  0x35   : > { %309 = vst [vmem:[%s2308_s8 + $0x1e0] sm:$0xff] %v308_v60  ;;  %311 = vst [vmem:[%s2308_s8 + $0x1e8] sm:$0xff] %v310_v61  ;;  %v314_v63 = vld [vmem:[%s2303_s7 + $0x798] sm:$0xff]  ;;  %v316_v0 = vld [vmem:[%s2303_s7 + $0x800] sm:$0xff] }
  0x36   : > { %313 = vst [vmem:[%s2308_s8 + $0x1f0] sm:$0xff] %v312_v62  ;;  %v318_v1 = vld [vmem:[%s2303_s7 + $0x808] sm:$0xff]  ;;  %315 = vst [vmem:[%s2308_s8 + $0x1f8] sm:$0xff] %v314_v63  ;;  %v320_v2 = vld [vmem:[%s2303_s7 + $0x810] sm:$0xff] }
  0x37   : > { %317 = vst [vmem:[%s2308_s8 + $0x200] sm:$0xff] %v316_v0  ;;  %319 = vst [vmem:[%s2308_s8 + $0x208] sm:$0xff] %v318_v1  ;;  %v322_v3 = vld [vmem:[%s2303_s7 + $0x818] sm:$0xff]  ;;  %v324_v4 = vld [vmem:[%s2303_s7 + $0x880] sm:$0xff] }
  0x38   : > { %321 = vst [vmem:[%s2308_s8 + $0x210] sm:$0xff] %v320_v2  ;;  %323 = vst [vmem:[%s2308_s8 + $0x218] sm:$0xff] %v322_v3  ;;  %v326_v5 = vld [vmem:[%s2303_s7 + $0x888] sm:$0xff]  ;;  %v328_v6 = vld [vmem:[%s2303_s7 + $0x890] sm:$0xff] }
  0x39   : > { %325 = vst [vmem:[%s2308_s8 + $0x220] sm:$0xff] %v324_v4  ;;  %v330_v7 = vld [vmem:[%s2303_s7 + $0x898] sm:$0xff]  ;;  %327 = vst [vmem:[%s2308_s8 + $0x228] sm:$0xff] %v326_v5  ;;  %v332_v8 = vld [vmem:[%s2303_s7 + $0x900] sm:$0xff] }
  0x3a   : > { %329 = vst [vmem:[%s2308_s8 + $0x230] sm:$0xff] %v328_v6  ;;  %331 = vst [vmem:[%s2308_s8 + $0x238] sm:$0xff] %v330_v7  ;;  %v334_v9 = vld [vmem:[%s2303_s7 + $0x908] sm:$0xff]  ;;  %v336_v10 = vld [vmem:[%s2303_s7 + $0x910] sm:$0xff] }
  0x3b   : > { %333 = vst [vmem:[%s2308_s8 + $0x240] sm:$0xff] %v332_v8  ;;  %335 = vst [vmem:[%s2308_s8 + $0x248] sm:$0xff] %v334_v9  ;;  %v338_v11 = vld [vmem:[%s2303_s7 + $0x918] sm:$0xff]  ;;  %v340_v12 = vld [vmem:[%s2303_s7 + $0x980] sm:$0xff] }
  0x3c   : > { %337 = vst [vmem:[%s2308_s8 + $0x250] sm:$0xff] %v336_v10  ;;  %v342_v13 = vld [vmem:[%s2303_s7 + $0x988] sm:$0xff]  ;;  %339 = vst [vmem:[%s2308_s8 + $0x258] sm:$0xff] %v338_v11  ;;  %v344_v14 = vld [vmem:[%s2303_s7 + $0x990] sm:$0xff] }
  0x3d   : > { %341 = vst [vmem:[%s2308_s8 + $0x260] sm:$0xff] %v340_v12  ;;  %343 = vst [vmem:[%s2308_s8 + $0x268] sm:$0xff] %v342_v13  ;;  %v346_v15 = vld [vmem:[%s2303_s7 + $0x998] sm:$0xff]  ;;  %v348_v16 = vld [vmem:[%s2303_s7 + $0xa00] sm:$0xff] }
  0x3e   : > { %345 = vst [vmem:[%s2308_s8 + $0x270] sm:$0xff] %v344_v14  ;;  %347 = vst [vmem:[%s2308_s8 + $0x278] sm:$0xff] %v346_v15  ;;  %v350_v17 = vld [vmem:[%s2303_s7 + $0xa08] sm:$0xff]  ;;  %v352_v18 = vld [vmem:[%s2303_s7 + $0xa10] sm:$0xff] }
  0x3f   : > { %349 = vst [vmem:[%s2308_s8 + $0x280] sm:$0xff] %v348_v16  ;;  %v354_v19 = vld [vmem:[%s2303_s7 + $0xa18] sm:$0xff]  ;;  %351 = vst [vmem:[%s2308_s8 + $0x288] sm:$0xff] %v350_v17  ;;  %v356_v20 = vld [vmem:[%s2303_s7 + $0xa80] sm:$0xff] }
  0x40   : > { %353 = vst [vmem:[%s2308_s8 + $0x290] sm:$0xff] %v352_v18  ;;  %355 = vst [vmem:[%s2308_s8 + $0x298] sm:$0xff] %v354_v19  ;;  %v358_v21 = vld [vmem:[%s2303_s7 + $0xa88] sm:$0xff]  ;;  %v360_v22 = vld [vmem:[%s2303_s7 + $0xa90] sm:$0xff] }
  0x41   : > { %357 = vst [vmem:[%s2308_s8 + $0x2a0] sm:$0xff] %v356_v20  ;;  %359 = vst [vmem:[%s2308_s8 + $0x2a8] sm:$0xff] %v358_v21  ;;  %v362_v23 = vld [vmem:[%s2303_s7 + $0xa98] sm:$0xff]  ;;  %v364_v24 = vld [vmem:[%s2303_s7 + $0xb00] sm:$0xff] }
  0x42   : > { %361 = vst [vmem:[%s2308_s8 + $0x2b0] sm:$0xff] %v360_v22  ;;  %v366_v25 = vld [vmem:[%s2303_s7 + $0xb08] sm:$0xff]  ;;  %363 = vst [vmem:[%s2308_s8 + $0x2b8] sm:$0xff] %v362_v23  ;;  %v368_v26 = vld [vmem:[%s2303_s7 + $0xb10] sm:$0xff] }
  0x43   : > { %365 = vst [vmem:[%s2308_s8 + $0x2c0] sm:$0xff] %v364_v24  ;;  %367 = vst [vmem:[%s2308_s8 + $0x2c8] sm:$0xff] %v366_v25  ;;  %v370_v27 = vld [vmem:[%s2303_s7 + $0xb18] sm:$0xff]  ;;  %v372_v28 = vld [vmem:[%s2303_s7 + $0xb80] sm:$0xff] }
  0x44   : > { %369 = vst [vmem:[%s2308_s8 + $0x2d0] sm:$0xff] %v368_v26  ;;  %371 = vst [vmem:[%s2308_s8 + $0x2d8] sm:$0xff] %v370_v27  ;;  %v374_v29 = vld [vmem:[%s2303_s7 + $0xb88] sm:$0xff]  ;;  %v376_v30 = vld [vmem:[%s2303_s7 + $0xb90] sm:$0xff] }
  0x45   : > { %373 = vst [vmem:[%s2308_s8 + $0x2e0] sm:$0xff] %v372_v28  ;;  %v378_v31 = vld [vmem:[%s2303_s7 + $0xb98] sm:$0xff]  ;;  %375 = vst [vmem:[%s2308_s8 + $0x2e8] sm:$0xff] %v374_v29  ;;  %v380_v32 = vld [vmem:[%s2303_s7 + $0xc00] sm:$0xff] }
  0x46   : > { %377 = vst [vmem:[%s2308_s8 + $0x2f0] sm:$0xff] %v376_v30  ;;  %379 = vst [vmem:[%s2308_s8 + $0x2f8] sm:$0xff] %v378_v31  ;;  %v382_v33 = vld [vmem:[%s2303_s7 + $0xc08] sm:$0xff]  ;;  %v384_v34 = vld [vmem:[%s2303_s7 + $0xc10] sm:$0xff] }
  0x47   : > { %381 = vst [vmem:[%s2308_s8 + $0x300] sm:$0xff] %v380_v32  ;;  %383 = vst [vmem:[%s2308_s8 + $0x308] sm:$0xff] %v382_v33  ;;  %v386_v35 = vld [vmem:[%s2303_s7 + $0xc18] sm:$0xff]  ;;  %v388_v36 = vld [vmem:[%s2303_s7 + $0xc80] sm:$0xff] }
  0x48   : > { %385 = vst [vmem:[%s2308_s8 + $0x310] sm:$0xff] %v384_v34  ;;  %v390_v37 = vld [vmem:[%s2303_s7 + $0xc88] sm:$0xff]  ;;  %387 = vst [vmem:[%s2308_s8 + $0x318] sm:$0xff] %v386_v35  ;;  %v392_v38 = vld [vmem:[%s2303_s7 + $0xc90] sm:$0xff] }
  0x49   : > { %389 = vst [vmem:[%s2308_s8 + $0x320] sm:$0xff] %v388_v36  ;;  %391 = vst [vmem:[%s2308_s8 + $0x328] sm:$0xff] %v390_v37  ;;  %v394_v39 = vld [vmem:[%s2303_s7 + $0xc98] sm:$0xff]  ;;  %v396_v40 = vld [vmem:[%s2303_s7 + $0xd00] sm:$0xff] }
  0x4a   : > { %393 = vst [vmem:[%s2308_s8 + $0x330] sm:$0xff] %v392_v38  ;;  %395 = vst [vmem:[%s2308_s8 + $0x338] sm:$0xff] %v394_v39  ;;  %v398_v41 = vld [vmem:[%s2303_s7 + $0xd08] sm:$0xff]  ;;  %v400_v42 = vld [vmem:[%s2303_s7 + $0xd10] sm:$0xff] }
  0x4b   : > { %397 = vst [vmem:[%s2308_s8 + $0x340] sm:$0xff] %v396_v40  ;;  %v402_v43 = vld [vmem:[%s2303_s7 + $0xd18] sm:$0xff]  ;;  %399 = vst [vmem:[%s2308_s8 + $0x348] sm:$0xff] %v398_v41  ;;  %v404_v44 = vld [vmem:[%s2303_s7 + $0xd80] sm:$0xff] }
  0x4c   : > { %401 = vst [vmem:[%s2308_s8 + $0x350] sm:$0xff] %v400_v42  ;;  %403 = vst [vmem:[%s2308_s8 + $0x358] sm:$0xff] %v402_v43  ;;  %v406_v45 = vld [vmem:[%s2303_s7 + $0xd88] sm:$0xff]  ;;  %v408_v46 = vld [vmem:[%s2303_s7 + $0xd90] sm:$0xff] }
  0x4d   : > { %405 = vst [vmem:[%s2308_s8 + $0x360] sm:$0xff] %v404_v44  ;;  %407 = vst [vmem:[%s2308_s8 + $0x368] sm:$0xff] %v406_v45  ;;  %v410_v47 = vld [vmem:[%s2303_s7 + $0xd98] sm:$0xff]  ;;  %v412_v48 = vld [vmem:[%s2303_s7 + $0xe00] sm:$0xff] }
  0x4e   : > { %409 = vst [vmem:[%s2308_s8 + $0x370] sm:$0xff] %v408_v46  ;;  %v414_v49 = vld [vmem:[%s2303_s7 + $0xe08] sm:$0xff]  ;;  %411 = vst [vmem:[%s2308_s8 + $0x378] sm:$0xff] %v410_v47  ;;  %v416_v50 = vld [vmem:[%s2303_s7 + $0xe10] sm:$0xff] }
  0x4f   : > { %413 = vst [vmem:[%s2308_s8 + $0x380] sm:$0xff] %v412_v48  ;;  %415 = vst [vmem:[%s2308_s8 + $0x388] sm:$0xff] %v414_v49  ;;  %v418_v51 = vld [vmem:[%s2303_s7 + $0xe18] sm:$0xff]  ;;  %v420_v52 = vld [vmem:[%s2303_s7 + $0xe80] sm:$0xff] }
  0x50   : > { %417 = vst [vmem:[%s2308_s8 + $0x390] sm:$0xff] %v416_v50  ;;  %419 = vst [vmem:[%s2308_s8 + $0x398] sm:$0xff] %v418_v51  ;;  %v422_v53 = vld [vmem:[%s2303_s7 + $0xe88] sm:$0xff]  ;;  %v424_v54 = vld [vmem:[%s2303_s7 + $0xe90] sm:$0xff] }
  0x51   : > { %421 = vst [vmem:[%s2308_s8 + $0x3a0] sm:$0xff] %v420_v52  ;;  %v426_v55 = vld [vmem:[%s2303_s7 + $0xe98] sm:$0xff]  ;;  %423 = vst [vmem:[%s2308_s8 + $0x3a8] sm:$0xff] %v422_v53  ;;  %v428_v56 = vld [vmem:[%s2303_s7 + $0xf00] sm:$0xff] }
  0x52   : > { %425 = vst [vmem:[%s2308_s8 + $0x3b0] sm:$0xff] %v424_v54  ;;  %427 = vst [vmem:[%s2308_s8 + $0x3b8] sm:$0xff] %v426_v55  ;;  %v430_v57 = vld [vmem:[%s2303_s7 + $0xf08] sm:$0xff]  ;;  %v432_v58 = vld [vmem:[%s2303_s7 + $0xf10] sm:$0xff] }
  0x53   : > { %429 = vst [vmem:[%s2308_s8 + $0x3c0] sm:$0xff] %v428_v56  ;;  %431 = vst [vmem:[%s2308_s8 + $0x3c8] sm:$0xff] %v430_v57  ;;  %v434_v59 = vld [vmem:[%s2303_s7 + $0xf18] sm:$0xff]  ;;  %v436_v60 = vld [vmem:[%s2303_s7 + $0xf80] sm:$0xff] }
  0x54   : > { %433 = vst [vmem:[%s2308_s8 + $0x3d0] sm:$0xff] %v432_v58  ;;  %v438_v61 = vld [vmem:[%s2303_s7 + $0xf88] sm:$0xff]  ;;  %435 = vst [vmem:[%s2308_s8 + $0x3d8] sm:$0xff] %v434_v59  ;;  %v440_v62 = vld [vmem:[%s2303_s7 + $0xf90] sm:$0xff] }
  0x55   : > { %437 = vst [vmem:[%s2308_s8 + $0x3e0] sm:$0xff] %v436_v60  ;;  %439 = vst [vmem:[%s2308_s8 + $0x3e8] sm:$0xff] %v438_v61  ;;  %v442_v63 = vld [vmem:[%s2303_s7 + $0xf98] sm:$0xff] }
  0x56   : > { %441 = vst [vmem:[%s2308_s8 + $0x3f0] sm:$0xff] %v440_v62  ;;  %443 = vst [vmem:[%s2308_s8 + $0x3f8] sm:$0xff] %v442_v63 }
  0x57 PF: > { %p2090_p7 = scmp.ge.s32.totalorder %s2219_s18, 1  ;;  %p457_p8 = scmp.lt.s32.totalorder %s2219_s18, 9 }
  0x59   : > { %p458_p9 = pnand %p2090_p7, %p457_p8 }
  0x5a   : > { %s464_s9 = sand.u32 (!%p458_p9), 1, %s2195_s12   ;;  %s2092_s10 = sshll.u32 (!%p458_p9), %s2207_s15, 5 }
  0x5b   : > { %461 = sbr.rel (%p458_p9) target bundleno = 785 (0x311), region = 51  ;;  %s2091_s11 = sshll.u32 (!%p458_p9), %s464_s9, 10 }
  0x5c   : > { %p510_p10 = scmp.lt.s32.totalorder (!%p458_p9), %s2092_s10, 63  ;;  %s2577_s30 = scalar_lea.vmem (!%p458_p9), [#allocation3], %s2091_s11 }
  0x5d   : > { %p2097_p11 = scmp.ne.s32.totalorder (!%p458_p9), %s2203_s14, 0 }
  0x60   : > { %s3041_s10 = smov (!%p510_p10, %s2092_s10), 63  ;;  %529 = sbr.rel (%p2097_p11) target bundleno = 134 (0x86), region = 59 }
  0x61   : > { %s2093_s21 = sshll.u32 %s3041_s10, 3  ;;  %s2104_s22 = sshll.u32 %s3041_s10, 4 }
  0x62   : > { %s2570_s26 = scalar_lea.vmem %s3026_s2, %s2093_s21  ;;  %s2575_s29 = scalar_lea.vmem %s3027_s3, %s2104_s22 }
  0x65   : > { %v2221_v0 = vmov 0.0  }
  0x66   : > { %530 = vst [vmem:[#allocation2 + $0xb0] sm:$0xff] %v2221_v0  ;;  %531 = vst [vmem:[#allocation2 + $0x1b0] sm:$0xff] %v2221_v0 }
  0x67   : > { %532 = vst [vmem:[#allocation2 + $0xd8] sm:$0xff] %v2221_v0  ;;  %533 = vst [vmem:[#allocation2 + $0x18] sm:$0xff] %v2221_v0 }
  0x68   : > { %534 = vst [vmem:[#allocation2 + $0x50] sm:$0xff] %v2221_v0  ;;  %535 = vst [vmem:[#allocation2 + $0x168] sm:$0xff] %v2221_v0 }
  0x69   : > { %536 = vst [vmem:[#allocation2 + $0x130] sm:$0xff] %v2221_v0  ;;  %537 = vst [vmem:[#allocation2 + $0x48] sm:$0xff] %v2221_v0 }
  0x6a   : > { %538 = vst [vmem:[#allocation2 + $0x180] sm:$0xff] %v2221_v0  ;;  %539 = vst [vmem:[#allocation2 + $0x110] sm:$0xff] %v2221_v0 }
  0x6b   : > { %540 = vst [vmem:[#allocation2 + $0x118] sm:$0xff] %v2221_v0  ;;  %541 = vst [vmem:[#allocation2 + $0x98] sm:$0xff] %v2221_v0 }
  0x6c   : > { %542 = vst [vmem:[#allocation2 + $0x120] sm:$0xff] %v2221_v0  ;;  %543 = vst [vmem:[#allocation2 + $0x150] sm:$0xff] %v2221_v0 }
  0x6d   : > { %544 = vst [vmem:[#allocation2 + $0x108] sm:$0xff] %v2221_v0  ;;  %545 = vst [vmem:[#allocation2 + $0x60] sm:$0xff] %v2221_v0 }
  0x6e   : > { %546 = vst [vmem:[#allocation2 + $0xe0] sm:$0xff] %v2221_v0  ;;  %547 = vst [vmem:[#allocation2 + $0x188] sm:$0xff] %v2221_v0 }
  0x6f   : > { %548 = vst [vmem:[#allocation2 + $0x138] sm:$0xff] %v2221_v0  ;;  %549 = vst [vmem:[#allocation2 + $0x140] sm:$0xff] %v2221_v0 }
  0x70   : > { %550 = vst [vmem:[#allocation2 + $0x80] sm:$0xff] %v2221_v0  ;;  %551 = vst [vmem:[#allocation2 + $0x1a8] sm:$0xff] %v2221_v0 }
  0x71   : > { %552 = vst [vmem:[#allocation2 + $0x1b8] sm:$0xff] %v2221_v0  ;;  %553 = vst [vmem:[#allocation2 + $0x28] sm:$0xff] %v2221_v0 }
  0x72   : > { %554 = vst [vmem:[#allocation2 + $0x1e8] sm:$0xff] %v2221_v0  ;;  %555 = vst [vmem:[#allocation2 + $0xf8] sm:$0xff] %v2221_v0 }
  0x73   : > { %556 = vst [vmem:[#allocation2 + $0x160] sm:$0xff] %v2221_v0  ;;  %557 = vst [vmem:[#allocation2 + $0x30] sm:$0xff] %v2221_v0 }
  0x74   : > { %558 = vst [vmem:[#allocation2 + $0x1e0] sm:$0xff] %v2221_v0  ;;  %559 = vst [vmem:[#allocation2] sm:$0xff] %v2221_v0 }
  0x75   : > { %560 = vst [vmem:[#allocation2 + $0xf0] sm:$0xff] %v2221_v0  ;;  %561 = vst [vmem:[#allocation2 + $0x8] sm:$0xff] %v2221_v0 }
  0x76   : > { %562 = vst [vmem:[#allocation2 + $0x148] sm:$0xff] %v2221_v0  ;;  %563 = vst [vmem:[#allocation2 + $0x1d0] sm:$0xff] %v2221_v0 }
  0x77   : > { %564 = vst [vmem:[#allocation2 + $0x100] sm:$0xff] %v2221_v0  ;;  %565 = vst [vmem:[#allocation2 + $0xc8] sm:$0xff] %v2221_v0 }
  0x78   : > { %566 = vst [vmem:[#allocation2 + $0x40] sm:$0xff] %v2221_v0  ;;  %567 = vst [vmem:[#allocation2 + $0x1f8] sm:$0xff] %v2221_v0 }
  0x79   : > { %568 = vst [vmem:[#allocation2 + $0x20] sm:$0xff] %v2221_v0  ;;  %569 = vst [vmem:[#allocation2 + $0x128] sm:$0xff] %v2221_v0 }
  0x7a   : > { %570 = vst [vmem:[#allocation2 + $0x1a0] sm:$0xff] %v2221_v0  ;;  %571 = vst [vmem:[#allocation2 + $0x1f0] sm:$0xff] %v2221_v0 }
  0x7b   : > { %572 = vst [vmem:[#allocation2 + $0xe8] sm:$0xff] %v2221_v0  ;;  %573 = vst [vmem:[#allocation2 + $0x78] sm:$0xff] %v2221_v0 }
  0x7c   : > { %574 = vst [vmem:[#allocation2 + $0x70] sm:$0xff] %v2221_v0  ;;  %575 = vst [vmem:[#allocation2 + $0x90] sm:$0xff] %v2221_v0 }
  0x7d   : > { %576 = vst [vmem:[#allocation2 + $0x1d8] sm:$0xff] %v2221_v0  ;;  %577 = vst [vmem:[#allocation2 + $0xd0] sm:$0xff] %v2221_v0 }
  0x7e   : > { %578 = vst [vmem:[#allocation2 + $0xb8] sm:$0xff] %v2221_v0  ;;  %579 = vst [vmem:[#allocation2 + $0x88] sm:$0xff] %v2221_v0 }
  0x7f   : > { %580 = vst [vmem:[#allocation2 + $0xa8] sm:$0xff] %v2221_v0  ;;  %581 = vst [vmem:[#allocation2 + $0x1c8] sm:$0xff] %v2221_v0 }
  0x80   : > { %582 = vst [vmem:[#allocation2 + $0x170] sm:$0xff] %v2221_v0  ;;  %583 = vst [vmem:[#allocation2 + $0x178] sm:$0xff] %v2221_v0 }
  0x81   : > { %584 = vst [vmem:[#allocation2 + $0x68] sm:$0xff] %v2221_v0  ;;  %585 = vst [vmem:[#allocation2 + $0x190] sm:$0xff] %v2221_v0 }
  0x82   : > { %586 = vst [vmem:[#allocation2 + $0x198] sm:$0xff] %v2221_v0  ;;  %587 = vst [vmem:[#allocation2 + $0x38] sm:$0xff] %v2221_v0 }
  0x83   : > { %588 = vst [vmem:[#allocation2 + $0xc0] sm:$0xff] %v2221_v0  ;;  %589 = vst [vmem:[#allocation2 + $0x1c0] sm:$0xff] %v2221_v0 }
  0x84   : > { %590 = vst [vmem:[#allocation2 + $0x158] sm:$0xff] %v2221_v0  ;;  %591 = vst [vmem:[#allocation2 + $0x10] sm:$0xff] %v2221_v0 }
  0x85   : > { %592 = vst [vmem:[#allocation2 + $0x58] sm:$0xff] %v2221_v0  ;;  %593 = vst [vmem:[#allocation2 + $0xa0] sm:$0xff] %v2221_v0 }
  0x86 PF: > { %s2098_s12 = sshll.u32 %s2203_s14, 9  ;;  %v792_v1 = vld [vmem:[%s2577_s30 + $0x8] sm:$0xff]  ;;  %v794_v3 = vld [vmem:[%s2577_s30 + $0x18] sm:$0xff]  ;;  %p2100_p12 = scmp.ne.s32.totalorder %s2203_s14, 3 }
  0x87   : > { %s595_s15 = sshra.s32 %s2098_s12, 7  ;;  %v796_v2 = vld [vmem:[%s2577_s30 + $0x28] sm:$0xff]  ;;  %v798_v5 = vld [vmem:[%s2577_s30 + $0x38] sm:$0xff] }
  0x88   : > { %s2099_s4 = sshll.u32 %s595_s15, 3  ;;  %v920_v4 = vpack.c.bf16 %v796_v2, %v792_v1  ;;  %v922_v6 = vpack.c.bf16 %v798_v5, %v794_v3 }
  0x89   : > { %s2652_s7 = scalar_lea.vmem %s3024_s0, %s2099_s4 }
  0x8a   : > { %v656_v7 = vld [vmem:[%s2652_s7 + $0x708] sm:$0xff]  ;;  %v658_v9 = vld [vmem:[%s2652_s7 + $0x718] sm:$0xff]  ;;  %1079 = vmatprep.mubr.bf16.mxu0 %v920_v4  ;;  %v655_v12 = vld [vmem:[%s2652_s7 + $0x700] sm:$0xff]  ;;  %1272 = vmatprep.mubr.bf16.mxu1 %v922_v6 }
  0x8b   : > { %v660_v8 = vld [vmem:[%s2652_s7 + $0x788] sm:$0xff]  ;;  %v662_v11 = vld [vmem:[%s2652_s7 + $0x798] sm:$0xff]  ;;  %v659_v13 = vld [vmem:[%s2652_s7 + $0x780] sm:$0xff] }
  0x8c   : > { %v1012_v10 = vpack.c.bf16 %v660_v8, %v656_v7  ;;  %v1014_v14 = vpack.c.bf16 %v662_v11, %v658_v9  ;;  %v1011_v15 = vpack.c.bf16 %v659_v13, %v655_v12  ;;  %v657_v16 = vld [vmem:[%s2652_s7 + $0x710] sm:$0xff]  ;;  %v648_v18 = vld [vmem:[%s2652_s7 + $0x608] sm:$0xff]  ;;  %v650_v21 = vld [vmem:[%s2652_s7 + $0x618] sm:$0xff] }
  0x8d   : > { %v661_v17 = vld [vmem:[%s2652_s7 + $0x790] sm:$0xff]  ;;  %v652_v20 = vld [vmem:[%s2652_s7 + $0x688] sm:$0xff]  ;;  %v654_v22 = vld [vmem:[%s2652_s7 + $0x698] sm:$0xff] }
  0x8e   : > { %1047 = vmatprep.subr.bf16.mxu0 %v1012_v10  ;;  %v1013_v19 = vpack.c.bf16 %v661_v17, %v657_v16  ;;  %1240 = vmatprep.subr.bf16.mxu1 %v1014_v14  ;;  %v1008_v23 = vpack.c.bf16 %v652_v20, %v648_v18  ;;  %v1010_v24 = vpack.c.bf16 %v654_v22, %v650_v21  ;;  %v647_v25 = vld [vmem:[%s2652_s7 + $0x600] sm:$0xff]  ;;  %v649_v27 = vld [vmem:[%s2652_s7 + $0x610] sm:$0xff]  ;;  %v640_v29 = vld [vmem:[%s2652_s7 + $0x508] sm:$0xff] }
  0x8f   : > { %1048 = vmatpush1.bf16.xpose.msra.mxu0 %v1011_v15  ;;  %v651_v26 = vld [vmem:[%s2652_s7 + $0x680] sm:$0xff]  ;;  %v653_v28 = vld [vmem:[%s2652_s7 + $0x690] sm:$0xff]  ;;  %v644_v30 = vld [vmem:[%s2652_s7 + $0x588] sm:$0xff] }
  0x90   : > { %1241 = vmatpush1.bf16.xpose.msra.mxu1 %v1013_v19  ;;  %1049 = vmatprep.subr.bf16.mxu0 %v1008_v23  ;;  %v642_v31 = vld [vmem:[%s2652_s7 + $0x518] sm:$0xff]  ;;  %v1007_v33 = vpack.c.bf16 %v651_v26, %v647_v25  ;;  %v1009_v34 = vpack.c.bf16 %v653_v28, %v649_v27  ;;  %v1004_v35 = vpack.c.bf16 %v644_v30, %v640_v29  ;;  %v639_v37 = vld [vmem:[%s2652_s7 + $0x500] sm:$0xff]  ;;  %v641_v39 = vld [vmem:[%s2652_s7 + $0x510] sm:$0xff] }
  0x91   : > { %1242 = vmatprep.subr.bf16.mxu1 %v1010_v24  ;;  %v646_v32 = vld [vmem:[%s2652_s7 + $0x598] sm:$0xff]  ;;  %v643_v38 = vld [vmem:[%s2652_s7 + $0x580] sm:$0xff]  ;;  %v645_v40 = vld [vmem:[%s2652_s7 + $0x590] sm:$0xff] }
  0x92   : > { %v1006_v36 = vpack.c.bf16 %v646_v32, %v642_v31  ;;  %v632_v41 = vld [vmem:[%s2652_s7 + $0x408] sm:$0xff]  ;;  %v634_v43 = vld [vmem:[%s2652_s7 + $0x418] sm:$0xff]  ;;  %v1003_v45 = vpack.c.bf16 %v643_v38, %v639_v37  ;;  %v1005_v46 = vpack.c.bf16 %v645_v40, %v641_v39  ;;  %v631_v49 = vld [vmem:[%s2652_s7 + $0x400] sm:$0xff] }
  0x93   : > { %v636_v42 = vld [vmem:[%s2652_s7 + $0x488] sm:$0xff]  ;;  %v638_v44 = vld [vmem:[%s2652_s7 + $0x498] sm:$0xff]  ;;  %v635_v50 = vld [vmem:[%s2652_s7 + $0x480] sm:$0xff] }
  0x94   : > { %v1000_v47 = vpack.c.bf16 %v636_v42, %v632_v41  ;;  %v1002_v48 = vpack.c.bf16 %v638_v44, %v634_v43  ;;  %v633_v51 = vld [vmem:[%s2652_s7 + $0x410] sm:$0xff]  ;;  %v624_v53 = vld [vmem:[%s2652_s7 + $0x308] sm:$0xff]  ;;  %v626_v55 = vld [vmem:[%s2652_s7 + $0x318] sm:$0xff]  ;;  %v999_v57 = vpack.c.bf16 %v635_v50, %v631_v49 }
  0x95   : > { %v637_v52 = vld [vmem:[%s2652_s7 + $0x490] sm:$0xff]  ;;  %v628_v54 = vld [vmem:[%s2652_s7 + $0x388] sm:$0xff]  ;;  %v630_v56 = vld [vmem:[%s2652_s7 + $0x398] sm:$0xff] }
  0x96   : > { %v1001_v58 = vpack.c.bf16 %v637_v52, %v633_v51  ;;  %v996_v59 = vpack.c.bf16 %v628_v54, %v624_v53  ;;  %v998_v60 = vpack.c.bf16 %v630_v56, %v626_v55  ;;  %v623_v61 = vld [vmem:[%s2652_s7 + $0x300] sm:$0xff]  ;;  %v625_v63 = vld [vmem:[%s2652_s7 + $0x310] sm:$0xff]  ;;  %v616_v1 = vld [vmem:[%s2652_s7 + $0x208] sm:$0xff] }
  0x97   : > { %1050 = vmatpush1.bf16.xpose.msra.mxu0 %v1007_v33  ;;  %v627_v62 = vld [vmem:[%s2652_s7 + $0x380] sm:$0xff]  ;;  %v629_v0 = vld [vmem:[%s2652_s7 + $0x390] sm:$0xff]  ;;  %v620_v2 = vld [vmem:[%s2652_s7 + $0x288] sm:$0xff] }
  0x98   : > { %1243 = vmatpush1.bf16.xpose.msra.mxu1 %v1009_v34  ;;  %1051 = vmatprep.subr.bf16.mxu0 %v1004_v35  ;;  %v618_v3 = vld [vmem:[%s2652_s7 + $0x218] sm:$0xff]  ;;  %v995_v5 = vpack.c.bf16 %v627_v62, %v623_v61  ;;  %v997_v6 = vpack.c.bf16 %v629_v0, %v625_v63  ;;  %v992_v7 = vpack.c.bf16 %v620_v2, %v616_v1  ;;  %v615_v9 = vld [vmem:[%s2652_s7 + $0x200] sm:$0xff]  ;;  %v617_v11 = vld [vmem:[%s2652_s7 + $0x210] sm:$0xff] }
  0x99   : > { %1244 = vmatprep.subr.bf16.mxu1 %v1006_v36  ;;  %v622_v4 = vld [vmem:[%s2652_s7 + $0x298] sm:$0xff]  ;;  %v619_v10 = vld [vmem:[%s2652_s7 + $0x280] sm:$0xff]  ;;  %v621_v12 = vld [vmem:[%s2652_s7 + $0x290] sm:$0xff] }
  0x9a   : > { %v994_v8 = vpack.c.bf16 %v622_v4, %v618_v3  ;;  %v608_v13 = vld [vmem:[%s2652_s7 + $0x108] sm:$0xff]  ;;  %v610_v15 = vld [vmem:[%s2652_s7 + $0x118] sm:$0xff]  ;;  %v991_v17 = vpack.c.bf16 %v619_v10, %v615_v9  ;;  %v993_v18 = vpack.c.bf16 %v621_v12, %v617_v11  ;;  %v607_v21 = vld [vmem:[%s2652_s7 + $0x100] sm:$0xff] }
  0x9b   : > { %v612_v14 = vld [vmem:[%s2652_s7 + $0x188] sm:$0xff]  ;;  %v614_v16 = vld [vmem:[%s2652_s7 + $0x198] sm:$0xff]  ;;  %v611_v22 = vld [vmem:[%s2652_s7 + $0x180] sm:$0xff] }
  0x9c   : > { %v988_v19 = vpack.c.bf16 %v612_v14, %v608_v13  ;;  %v990_v20 = vpack.c.bf16 %v614_v16, %v610_v15  ;;  %v609_v23 = vld [vmem:[%s2652_s7 + $0x110] sm:$0xff]  ;;  %v600_v25 = vld [vmem:[%s2652_s7 + $0x8] sm:$0xff]  ;;  %v602_v27 = vld [vmem:[%s2652_s7 + $0x18] sm:$0xff]  ;;  %v987_v29 = vpack.c.bf16 %v611_v22, %v607_v21 }
  0x9d   : > { %v613_v24 = vld [vmem:[%s2652_s7 + $0x190] sm:$0xff]  ;;  %v604_v26 = vld [vmem:[%s2652_s7 + $0x88] sm:$0xff]  ;;  %v606_v28 = vld [vmem:[%s2652_s7 + $0x98] sm:$0xff] }
  0x9e   : > { %v989_v30 = vpack.c.bf16 %v613_v24, %v609_v23  ;;  %v984_v31 = vpack.c.bf16 %v604_v26, %v600_v25  ;;  %v986_v32 = vpack.c.bf16 %v606_v28, %v602_v27  ;;  %v599_v33 = vld [vmem:[%s2652_s7] sm:$0xff]  ;;  %v601_v35 = vld [vmem:[%s2652_s7 + $0x10] sm:$0xff]  ;;  %v720_v37 = vld [vmem:[%s2652_s7 + $0xf08] sm:$0xff] }
  0x9f   : > { %1052 = vmatpush1.bf16.xpose.msra.mxu0 %v1003_v45  ;;  %v603_v34 = vld [vmem:[%s2652_s7 + $0x80] sm:$0xff]  ;;  %v605_v36 = vld [vmem:[%s2652_s7 + $0x90] sm:$0xff]  ;;  %v724_v38 = vld [vmem:[%s2652_s7 + $0xf88] sm:$0xff] }
  0xa0   : > { %1245 = vmatpush1.bf16.xpose.msra.mxu1 %v1005_v46  ;;  %1053 = vmatprep.subr.bf16.mxu0 %v1000_v47  ;;  %v722_v39 = vld [vmem:[%s2652_s7 + $0xf18] sm:$0xff]  ;;  %v983_v41 = vpack.c.bf16 %v603_v34, %v599_v33  ;;  %v985_v42 = vpack.c.bf16 %v605_v36, %v601_v35  ;;  %v1044_v43 = vpack.c.bf16 %v724_v38, %v720_v37  ;;  %v719_v45 = vld [vmem:[%s2652_s7 + $0xf00] sm:$0xff]  ;;  %v721_v47 = vld [vmem:[%s2652_s7 + $0xf10] sm:$0xff] }
  0xa1   : > { %1246 = vmatprep.subr.bf16.mxu1 %v1002_v48  ;;  %v726_v40 = vld [vmem:[%s2652_s7 + $0xf98] sm:$0xff]  ;;  %v723_v46 = vld [vmem:[%s2652_s7 + $0xf80] sm:$0xff]  ;;  %v725_v48 = vld [vmem:[%s2652_s7 + $0xf90] sm:$0xff] }
  0xa2   : > { %v1046_v44 = vpack.c.bf16 %v726_v40, %v722_v39  ;;  %v712_v49 = vld [vmem:[%s2652_s7 + $0xe08] sm:$0xff]  ;;  %v714_v51 = vld [vmem:[%s2652_s7 + $0xe18] sm:$0xff]  ;;  %v1043_v53 = vpack.c.bf16 %v723_v46, %v719_v45  ;;  %v1045_v54 = vpack.c.bf16 %v725_v48, %v721_v47 }
  0xa3   : > { %v716_v50 = vld [vmem:[%s2652_s7 + $0xe88] sm:$0xff]  ;;  %v718_v52 = vld [vmem:[%s2652_s7 + $0xe98] sm:$0xff] }
  0xa4   : > { %v1040_v55 = vpack.c.bf16 %v716_v50, %v712_v49  ;;  %v1042_v56 = vpack.c.bf16 %v718_v52, %v714_v51  ;;  %v704_v61 = vld [vmem:[%s2652_s7 + $0xd08] sm:$0xff]  ;;  %v706_v63 = vld [vmem:[%s2652_s7 + $0xd18] sm:$0xff] }
  0xa5   : > { %v708_v62 = vld [vmem:[%s2652_s7 + $0xd88] sm:$0xff]  ;;  %v710_v0 = vld [vmem:[%s2652_s7 + $0xd98] sm:$0xff] }
  0xa6   : > { %v1036_v3 = vpack.c.bf16 %v708_v62, %v704_v61  ;;  %v1038_v4 = vpack.c.bf16 %v710_v0, %v706_v63  ;;  %v696_v9 = vld [vmem:[%s2652_s7 + $0xc08] sm:$0xff]  ;;  %v698_v11 = vld [vmem:[%s2652_s7 + $0xc18] sm:$0xff] }
  0xa7   : > { %1054 = vmatpush1.bf16.xpose.msra.mxu0 %v999_v57  ;;  %v711_v57 = vld [vmem:[%s2652_s7 + $0xe00] sm:$0xff]  ;;  %v700_v10 = vld [vmem:[%s2652_s7 + $0xc88] sm:$0xff]  ;;  %v702_v12 = vld [vmem:[%s2652_s7 + $0xc98] sm:$0xff] }
  0xa8   : > { %1247 = vmatpush1.bf16.xpose.msra.mxu1 %v1001_v58  ;;  %1055 = vmatprep.subr.bf16.mxu0 %v996_v59  ;;  %v715_v58 = vld [vmem:[%s2652_s7 + $0xe80] sm:$0xff]  ;;  %v713_v59 = vld [vmem:[%s2652_s7 + $0xe10] sm:$0xff]  ;;  %v1032_v15 = vpack.c.bf16 %v700_v10, %v696_v9  ;;  %v1034_v16 = vpack.c.bf16 %v702_v12, %v698_v11  ;;  %v688_v21 = vld [vmem:[%s2652_s7 + $0xb08] sm:$0xff] }
  0xa9   : > { %1248 = vmatprep.subr.bf16.mxu1 %v998_v60  ;;  %v717_v60 = vld [vmem:[%s2652_s7 + $0xe90] sm:$0xff]  ;;  %v1039_v1 = vpack.c.bf16 %v715_v58, %v711_v57  ;;  %v692_v22 = vld [vmem:[%s2652_s7 + $0xb88] sm:$0xff]  ;;  %v690_v23 = vld [vmem:[%s2652_s7 + $0xb18] sm:$0xff] }
  0xaa   : > { %v1041_v2 = vpack.c.bf16 %v717_v60, %v713_v59  ;;  %v694_v24 = vld [vmem:[%s2652_s7 + $0xb98] sm:$0xff]  ;;  %v1028_v27 = vpack.c.bf16 %v692_v22, %v688_v21  ;;  %v680_v33 = vld [vmem:[%s2652_s7 + $0xa08] sm:$0xff]  ;;  %v793_v9 = vld [vmem:[%s2577_s30 + $0x10] sm:$0xff] }
  0xab   : > { %v1030_v28 = vpack.c.bf16 %v694_v24, %v690_v23  ;;  %v684_v34 = vld [vmem:[%s2652_s7 + $0xa88] sm:$0xff]  ;;  %v682_v35 = vld [vmem:[%s2652_s7 + $0xa18] sm:$0xff]  ;;  %v797_v10 = vld [vmem:[%s2577_s30 + $0x30] sm:$0xff] }
  0xac   : > { %v686_v36 = vld [vmem:[%s2652_s7 + $0xa98] sm:$0xff]  ;;  %v1024_v39 = vpack.c.bf16 %v684_v34, %v680_v33  ;;  %v672_v45 = vld [vmem:[%s2652_s7 + $0x908] sm:$0xff]  ;;  %v801_v21 = vld [vmem:[%s2577_s30 + $0x50] sm:$0xff] }
  0xad   : > { %v1026_v40 = vpack.c.bf16 %v686_v36, %v682_v35  ;;  %v676_v46 = vld [vmem:[%s2652_s7 + $0x988] sm:$0xff]  ;;  %v674_v47 = vld [vmem:[%s2652_s7 + $0x918] sm:$0xff]  ;;  %v805_v22 = vld [vmem:[%s2577_s30 + $0x70] sm:$0xff] }
  0xae   : > { %v678_v48 = vld [vmem:[%s2652_s7 + $0x998] sm:$0xff]  ;;  %v1020_v51 = vpack.c.bf16 %v676_v46, %v672_v45  ;;  %v664_v57 = vld [vmem:[%s2652_s7 + $0x808] sm:$0xff]  ;;  %v809_v33 = vld [vmem:[%s2577_s30 + $0x90] sm:$0xff] }
  0xaf   : > { %1056 = vmatpush1.bf16.xpose.msra.mxu0 %v995_v5  ;;  %v703_v5 = vld [vmem:[%s2652_s7 + $0xd00] sm:$0xff]  ;;  %v1022_v52 = vpack.c.bf16 %v678_v48, %v674_v47  ;;  %v668_v58 = vld [vmem:[%s2652_s7 + $0x888] sm:$0xff]  ;;  %v666_v59 = vld [vmem:[%s2652_s7 + $0x818] sm:$0xff] }
  0xb0   : > { %1249 = vmatpush1.bf16.xpose.msra.mxu1 %v997_v6  ;;  %1057 = vmatprep.subr.bf16.mxu0 %v992_v7  ;;  %v707_v6 = vld [vmem:[%s2652_s7 + $0xd80] sm:$0xff]  ;;  %v705_v7 = vld [vmem:[%s2652_s7 + $0xd10] sm:$0xff]  ;;  %v670_v60 = vld [vmem:[%s2652_s7 + $0x898] sm:$0xff]  ;;  %v1016_v63 = vpack.c.bf16 %v668_v58, %v664_v57 }
  0xb1   : > { %1250 = vmatprep.subr.bf16.mxu1 %v994_v8  ;;  %v709_v8 = vld [vmem:[%s2652_s7 + $0xd90] sm:$0xff]  ;;  %v1035_v13 = vpack.c.bf16 %v707_v6, %v703_v5  ;;  %v1018_v0 = vpack.c.bf16 %v670_v60, %v666_v59  ;;  %v800_v11 = vld [vmem:[%s2577_s30 + $0x48] sm:$0xff] }
  0xb2   : > { %v1037_v14 = vpack.c.bf16 %v709_v8, %v705_v7  ;;  %v791_v7 = vld [vmem:[%s2577_s30] sm:$0xff]  ;;  %v804_v12 = vld [vmem:[%s2577_s30 + $0x68] sm:$0xff]  ;;  %v813_v34 = vld [vmem:[%s2577_s30 + $0xb0] sm:$0xff] }
  0xb3   : > { %v795_v8 = vld [vmem:[%s2577_s30 + $0x20] sm:$0xff]  ;;  %v808_v23 = vld [vmem:[%s2577_s30 + $0x88] sm:$0xff]  ;;  %v817_v45 = vld [vmem:[%s2577_s30 + $0xd0] sm:$0xff] }
  0xb4   : > { %v812_v24 = vld [vmem:[%s2577_s30 + $0xa8] sm:$0xff]  ;;  %v821_v46 = vld [vmem:[%s2577_s30 + $0xf0] sm:$0xff] }
  0xb5   : > { %v816_v35 = vld [vmem:[%s2577_s30 + $0xc8] sm:$0xff]  ;;  %v825_v57 = vld [vmem:[%s2577_s30 + $0x110] sm:$0xff] }
  0xb6   : > { %v820_v36 = vld [vmem:[%s2577_s30 + $0xe8] sm:$0xff]  ;;  %v829_v58 = vld [vmem:[%s2577_s30 + $0x130] sm:$0xff] }
  0xb7   : > { %1058 = vmatpush1.bf16.xpose.msra.mxu0 %v991_v17  ;;  %v695_v17 = vld [vmem:[%s2652_s7 + $0xc00] sm:$0xff]  ;;  %v824_v47 = vld [vmem:[%s2577_s30 + $0x108] sm:$0xff] }
  0xb8   : > { %1251 = vmatpush1.bf16.xpose.msra.mxu1 %v993_v18  ;;  %1059 = vmatprep.subr.bf16.mxu0 %v988_v19  ;;  %v699_v18 = vld [vmem:[%s2652_s7 + $0xc80] sm:$0xff]  ;;  %v697_v19 = vld [vmem:[%s2652_s7 + $0xc10] sm:$0xff]  ;;  %v828_v48 = vld [vmem:[%s2577_s30 + $0x128] sm:$0xff] }
  0xb9   : > { %1252 = vmatprep.subr.bf16.mxu1 %v990_v20  ;;  %v701_v20 = vld [vmem:[%s2652_s7 + $0xc90] sm:$0xff]  ;;  %v1031_v25 = vpack.c.bf16 %v699_v18, %v695_v17  ;;  %v924_v17 = vpack.c.bf16 %v804_v12, %v800_v11  ;;  %v832_v59 = vld [vmem:[%s2577_s30 + $0x148] sm:$0xff] }
  0xba   : > { %v1033_v26 = vpack.c.bf16 %v701_v20, %v697_v19  ;;  %v799_v19 = vld [vmem:[%s2577_s30 + $0x40] sm:$0xff]  ;;  %v836_v60 = vld [vmem:[%s2577_s30 + $0x168] sm:$0xff] }
  0xbb   : > { %v803_v20 = vld [vmem:[%s2577_s30 + $0x60] sm:$0xff] }
  0xbf   : > { %1060 = vmatpush1.bf16.xpose.msra.mxu0 %v987_v29  ;;  %v687_v29 = vld [vmem:[%s2652_s7 + $0xb00] sm:$0xff] }
  0xc0   : > { %1253 = vmatpush1.bf16.xpose.msra.mxu1 %v989_v30  ;;  %1061 = vmatprep.subr.bf16.mxu0 %v984_v31  ;;  %v691_v30 = vld [vmem:[%s2652_s7 + $0xb80] sm:$0xff]  ;;  %v689_v31 = vld [vmem:[%s2652_s7 + $0xb10] sm:$0xff] }
  0xc1   : > { %1254 = vmatprep.subr.bf16.mxu1 %v986_v32  ;;  %v693_v32 = vld [vmem:[%s2652_s7 + $0xb90] sm:$0xff]  ;;  %v1027_v37 = vpack.c.bf16 %v691_v30, %v687_v29  ;;  %v928_v29 = vpack.c.bf16 %v812_v24, %v808_v23 }
  0xc2   : > { %v1029_v38 = vpack.c.bf16 %v693_v32, %v689_v31  ;;  %v807_v31 = vld [vmem:[%s2577_s30 + $0x80] sm:$0xff] }
  0xc3   : > { %v811_v32 = vld [vmem:[%s2577_s30 + $0xa0] sm:$0xff] }
  0xc7   : > { %1062 = vmatpush1.bf16.xpose.msra.mxu0 %v983_v41  ;;  %v679_v41 = vld [vmem:[%s2652_s7 + $0xa00] sm:$0xff] }
  0xc8   : > { %1255 = vmatpush1.bf16.xpose.msra.mxu1 %v985_v42  ;;  %1063 = vmatprep.subr.bf16.mxu0 %v1044_v43  ;;  %v683_v42 = vld [vmem:[%s2652_s7 + $0xa80] sm:$0xff]  ;;  %v681_v43 = vld [vmem:[%s2652_s7 + $0xa10] sm:$0xff] }
  0xc9   : > { %1256 = vmatprep.subr.bf16.mxu1 %v1046_v44  ;;  %v685_v44 = vld [vmem:[%s2652_s7 + $0xa90] sm:$0xff]  ;;  %v1023_v49 = vpack.c.bf16 %v683_v42, %v679_v41  ;;  %v932_v41 = vpack.c.bf16 %v820_v36, %v816_v35 }
  0xca   : > { %v1025_v50 = vpack.c.bf16 %v685_v44, %v681_v43  ;;  %v815_v43 = vld [vmem:[%s2577_s30 + $0xc0] sm:$0xff] }
  0xcb   : > { %v819_v44 = vld [vmem:[%s2577_s30 + $0xe0] sm:$0xff] }
  0xcf   : > { %1064 = vmatpush2.bf16.xpose.msra.mxu0 %v1043_v53  ;;  %v671_v53 = vld [vmem:[%s2652_s7 + $0x900] sm:$0xff] }
  0xd0   : > { %1257 = vmatpush2.bf16.xpose.msra.mxu1 %v1045_v54  ;;  %1065 = vmatprep.subr.bf16.mxu0 %v1040_v55  ;;  %v675_v54 = vld [vmem:[%s2652_s7 + $0x980] sm:$0xff]  ;;  %v673_v55 = vld [vmem:[%s2652_s7 + $0x910] sm:$0xff] }
  0xd1   : > { %1258 = vmatprep.subr.bf16.mxu1 %v1042_v56  ;;  %v677_v56 = vld [vmem:[%s2652_s7 + $0x990] sm:$0xff]  ;;  %v1019_v61 = vpack.c.bf16 %v675_v54, %v671_v53  ;;  %v936_v53 = vpack.c.bf16 %v828_v48, %v824_v47 }
  0xd2   : > { %v1021_v62 = vpack.c.bf16 %v677_v56, %v673_v55  ;;  %v823_v55 = vld [vmem:[%s2577_s30 + $0x100] sm:$0xff] }
  0xd3   : > { %v827_v56 = vld [vmem:[%s2577_s30 + $0x120] sm:$0xff] }
  0xd7   : > { %1066 = vmatpush2.bf16.xpose.msra.mxu0 %v1039_v1  ;;  %v663_v1 = vld [vmem:[%s2652_s7 + $0x800] sm:$0xff] }
  0xd8   : > { %1259 = vmatpush2.bf16.xpose.msra.mxu1 %v1041_v2  ;;  %1067 = vmatprep.subr.bf16.mxu0 %v1036_v3  ;;  %v667_v2 = vld [vmem:[%s2652_s7 + $0x880] sm:$0xff]  ;;  %v665_v3 = vld [vmem:[%s2652_s7 + $0x810] sm:$0xff] }
  0xd9   : > { %1260 = vmatprep.subr.bf16.mxu1 %v1038_v4  ;;  %v669_v4 = vld [vmem:[%s2652_s7 + $0x890] sm:$0xff]  ;;  %v1015_v5 = vpack.c.bf16 %v667_v2, %v663_v1  ;;  %v940_v1 = vpack.c.bf16 %v836_v60, %v832_v59 }
  0xda   : > { %v1017_v6 = vpack.c.bf16 %v669_v4, %v665_v3  ;;  %v831_v3 = vld [vmem:[%s2577_s30 + $0x140] sm:$0xff] }
  0xdb   : > { %v835_v4 = vld [vmem:[%s2577_s30 + $0x160] sm:$0xff] }
  0xdc   : > { %v939_v11 = vpack.c.bf16 %v835_v4, %v831_v3  ;;  %v880_v3 = vld [vmem:[%s2577_s30 + $0x2c8] sm:$0xff] }
  0xdd   : > { %v884_v4 = vld [vmem:[%s2577_s30 + $0x2e8] sm:$0xff] }
  0xdf   : > { %1068 = vmatpush2.bf16.xpose.msra.mxu0 %v1035_v13  ;;  %v802_v13 = vld [vmem:[%s2577_s30 + $0x58] sm:$0xff] }
  0xe0   : > { %1261 = vmatpush2.bf16.xpose.msra.mxu1 %v1037_v14  ;;  %1069 = vmatprep.subr.bf16.mxu0 %v1032_v15  ;;  %v806_v14 = vld [vmem:[%s2577_s30 + $0x78] sm:$0xff]  ;;  %v919_v15 = vpack.c.bf16 %v795_v8, %v791_v7  ;;  %v840_v7 = vld [vmem:[%s2577_s30 + $0x188] sm:$0xff] }
  0xe1   : > { %1262 = vmatprep.subr.bf16.mxu1 %v1034_v16  ;;  %v921_v16 = vpack.c.bf16 %v797_v10, %v793_v9  ;;  %v926_v18 = vpack.c.bf16 %v806_v14, %v802_v13  ;;  %v844_v8 = vld [vmem:[%s2577_s30 + $0x1a8] sm:$0xff]  ;;  %v842_v9 = vld [vmem:[%s2577_s30 + $0x198] sm:$0xff] }
  0xe2   : > { %v846_v10 = vld [vmem:[%s2577_s30 + $0x1b8] sm:$0xff]  ;;  %v944_v13 = vpack.c.bf16 %v844_v8, %v840_v7 }
  0xe3   : > { %v946_v14 = vpack.c.bf16 %v846_v10, %v842_v9  ;;  %v964_v9 = vpack.c.bf16 %v884_v4, %v880_v3 }
  0xe7   : > { %1070 = vmatpush2.bf16.xpose.msra.mxu0 %v1031_v25  ;;  %v810_v25 = vld [vmem:[%s2577_s30 + $0x98] sm:$0xff] }
  0xe8   : > { %1263 = vmatpush2.bf16.xpose.msra.mxu1 %v1033_v26  ;;  %1071 = vmatprep.subr.bf16.mxu0 %v1028_v27  ;;  %v814_v26 = vld [vmem:[%s2577_s30 + $0xb8] sm:$0xff]  ;;  %v923_v27 = vpack.c.bf16 %v803_v20, %v799_v19  ;;  %v848_v19 = vld [vmem:[%s2577_s30 + $0x1c8] sm:$0xff] }
  0xe9   : > { %1264 = vmatprep.subr.bf16.mxu1 %v1030_v28  ;;  %v925_v28 = vpack.c.bf16 %v805_v22, %v801_v21  ;;  %v930_v30 = vpack.c.bf16 %v814_v26, %v810_v25  ;;  %v852_v20 = vld [vmem:[%s2577_s30 + $0x1e8] sm:$0xff]  ;;  %v850_v21 = vld [vmem:[%s2577_s30 + $0x1d8] sm:$0xff] }
  0xea   : > { %v854_v22 = vld [vmem:[%s2577_s30 + $0x1f8] sm:$0xff]  ;;  %v948_v25 = vpack.c.bf16 %v852_v20, %v848_v19 }
  0xeb   : > { %v950_v26 = vpack.c.bf16 %v854_v22, %v850_v21 }
  0xef   : > { %1072 = vmatpush2.bf16.xpose.msra.mxu0 %v1027_v37  ;;  %v818_v37 = vld [vmem:[%s2577_s30 + $0xd8] sm:$0xff] }
  0xf0   : > { %1265 = vmatpush2.bf16.xpose.msra.mxu1 %v1029_v38  ;;  %1073 = vmatprep.subr.bf16.mxu0 %v1024_v39  ;;  %v822_v38 = vld [vmem:[%s2577_s30 + $0xf8] sm:$0xff]  ;;  %v927_v39 = vpack.c.bf16 %v811_v32, %v807_v31  ;;  %v856_v31 = vld [vmem:[%s2577_s30 + $0x208] sm:$0xff] }
  0xf1   : > { %1266 = vmatprep.subr.bf16.mxu1 %v1026_v40  ;;  %v929_v40 = vpack.c.bf16 %v813_v34, %v809_v33  ;;  %v934_v42 = vpack.c.bf16 %v822_v38, %v818_v37  ;;  %v860_v32 = vld [vmem:[%s2577_s30 + $0x228] sm:$0xff]  ;;  %v858_v33 = vld [vmem:[%s2577_s30 + $0x218] sm:$0xff] }
  0xf2   : > { %v862_v34 = vld [vmem:[%s2577_s30 + $0x238] sm:$0xff]  ;;  %v952_v37 = vpack.c.bf16 %v860_v32, %v856_v31 }
  0xf3   : > { %v954_v38 = vpack.c.bf16 %v862_v34, %v858_v33 }
  0xf7   : > { %1074 = vmatpush2.bf16.xpose.msra.mxu0 %v1023_v49  ;;  %v826_v49 = vld [vmem:[%s2577_s30 + $0x118] sm:$0xff] }
  0xf8   : > { %1267 = vmatpush2.bf16.xpose.msra.mxu1 %v1025_v50  ;;  %1075 = vmatprep.subr.bf16.mxu0 %v1020_v51  ;;  %v830_v50 = vld [vmem:[%s2577_s30 + $0x138] sm:$0xff]  ;;  %v931_v51 = vpack.c.bf16 %v819_v44, %v815_v43  ;;  %v864_v43 = vld [vmem:[%s2577_s30 + $0x248] sm:$0xff] }
  0xf9   : > { %1268 = vmatprep.subr.bf16.mxu1 %v1022_v52  ;;  %v933_v52 = vpack.c.bf16 %v821_v46, %v817_v45  ;;  %v938_v54 = vpack.c.bf16 %v830_v50, %v826_v49  ;;  %v868_v44 = vld [vmem:[%s2577_s30 + $0x268] sm:$0xff]  ;;  %v866_v45 = vld [vmem:[%s2577_s30 + $0x258] sm:$0xff] }
  0xfa   : > { %v870_v46 = vld [vmem:[%s2577_s30 + $0x278] sm:$0xff]  ;;  %v956_v49 = vpack.c.bf16 %v868_v44, %v864_v43 }
  0xfb   : > { %v958_v50 = vpack.c.bf16 %v870_v46, %v866_v45 }
  0xff   : > { %1076 = vmatpush2.bf16.xpose.msra.mxu0 %v1019_v61  ;;  %v834_v61 = vld [vmem:[%s2577_s30 + $0x158] sm:$0xff] }
 0x100   : > { %1269 = vmatpush2.bf16.xpose.msra.mxu1 %v1021_v62  ;;  %1077 = vmatprep.subr.bf16.mxu0 %v1016_v63  ;;  %v838_v62 = vld [vmem:[%s2577_s30 + $0x178] sm:$0xff]  ;;  %v935_v63 = vpack.c.bf16 %v827_v56, %v823_v55  ;;  %v872_v55 = vld [vmem:[%s2577_s30 + $0x288] sm:$0xff] }
 0x101   : > { %1270 = vmatprep.subr.bf16.mxu1 %v1018_v0  ;;  %v937_v0 = vpack.c.bf16 %v829_v58, %v825_v57  ;;  %v942_v2 = vpack.c.bf16 %v838_v62, %v834_v61  ;;  %v876_v56 = vld [vmem:[%s2577_s30 + $0x2a8] sm:$0xff]  ;;  %v874_v57 = vld [vmem:[%s2577_s30 + $0x298] sm:$0xff] }
 0x102   : > { %v878_v58 = vld [vmem:[%s2577_s30 + $0x2b8] sm:$0xff]  ;;  %v960_v61 = vpack.c.bf16 %v876_v56, %v872_v55 }
 0x103   : > { %v962_v62 = vpack.c.bf16 %v878_v58, %v874_v57 }
 0x107   : > { %1078 = vmatpush2.bf16.xpose.msra.mxu0 %v1015_v5  ;;  %v833_v5 = vld [vmem:[%s2577_s30 + $0x150] sm:$0xff] }
 0x108   : > { %1271 = vmatpush2.bf16.xpose.msra.mxu1 %v1017_v6  ;;  %v837_v6 = vld [vmem:[%s2577_s30 + $0x170] sm:$0xff] }
 0x109   : > { %v941_v12 = vpack.c.bf16 %v837_v6, %v833_v5  ;;  %v882_v5 = vld [vmem:[%s2577_s30 + $0x2d8] sm:$0xff] }
 0x10a   : > { %v886_v6 = vld [vmem:[%s2577_s30 + $0x2f8] sm:$0xff] }
 0x10b   : > { %v966_v10 = vpack.c.bf16 %v886_v6, %v882_v5  ;;  %v728_v6 = vld [vmem:[#allocation2 + $0x1b0] sm:$0xff] }
 0x10e   : > { %1080 = vmatmul.mubr.bf16.vlgmr.msra.gmra.mxu0 %v919_v15  ;;  %v839_v15 = vld [vmem:[%s2577_s30 + $0x180] sm:$0xff] }
 0x10f   : > { %1273 = vmatmul.mubr.bf16.vlgmr.msra.gmra.mxu1 %v921_v16  ;;  %1089 = vmatprep.mubr.bf16.mxu0 %v924_v17  ;;  %v843_v16 = vld [vmem:[%s2577_s30 + $0x1a0] sm:$0xff]  ;;  %v841_v17 = vld [vmem:[%s2577_s30 + $0x190] sm:$0xff] }
 0x110   : > { %1282 = vmatprep.mubr.bf16.mxu1 %v926_v18  ;;  %v845_v18 = vld [vmem:[%s2577_s30 + $0x1b0] sm:$0xff]  ;;  %v943_v23 = vpack.c.bf16 %v843_v16, %v839_v15  ;;  %v888_v15 = vld [vmem:[%s2577_s30 + $0x308] sm:$0xff] }
 0x111   : > { %v945_v24 = vpack.c.bf16 %v845_v18, %v841_v17  ;;  %v892_v16 = vld [vmem:[%s2577_s30 + $0x328] sm:$0xff]  ;;  %v890_v17 = vld [vmem:[%s2577_s30 + $0x318] sm:$0xff] }
 0x112   : > { %v894_v18 = vld [vmem:[%s2577_s30 + $0x338] sm:$0xff]  ;;  %v968_v21 = vpack.c.bf16 %v892_v16, %v888_v15 }
 0x113   : > { %v970_v22 = vpack.c.bf16 %v894_v18, %v890_v17  ;;  %v730_v16 = vld [vmem:[#allocation2 + $0x18] sm:$0xff] }
 0x116   : > { %1090 = vmatmul.mubr.bf16.gmra.mxu0 %v923_v27  ;;  %v847_v27 = vld [vmem:[%s2577_s30 + $0x1c0] sm:$0xff] }
 0x117   : > { %1283 = vmatmul.mubr.bf16.gmra.mxu1 %v925_v28  ;;  %1099 = vmatprep.mubr.bf16.mxu0 %v928_v29  ;;  %v851_v28 = vld [vmem:[%s2577_s30 + $0x1e0] sm:$0xff]  ;;  %v849_v29 = vld [vmem:[%s2577_s30 + $0x1d0] sm:$0xff] }
 0x118   : > { %1292 = vmatprep.mubr.bf16.mxu1 %v930_v30  ;;  %v853_v30 = vld [vmem:[%s2577_s30 + $0x1f0] sm:$0xff]  ;;  %v947_v35 = vpack.c.bf16 %v851_v28, %v847_v27  ;;  %v896_v27 = vld [vmem:[%s2577_s30 + $0x348] sm:$0xff] }
 0x119   : > { %v949_v36 = vpack.c.bf16 %v853_v30, %v849_v29  ;;  %v900_v28 = vld [vmem:[%s2577_s30 + $0x368] sm:$0xff]  ;;  %v898_v29 = vld [vmem:[%s2577_s30 + $0x358] sm:$0xff] }
 0x11a   : > { %v902_v30 = vld [vmem:[%s2577_s30 + $0x378] sm:$0xff]  ;;  %v972_v33 = vpack.c.bf16 %v900_v28, %v896_v27 }
 0x11b   : > { %v974_v34 = vpack.c.bf16 %v902_v30, %v898_v29 }
 0x11e   : > { %1100 = vmatmul.mubr.bf16.gmra.mxu0 %v927_v39  ;;  %v855_v39 = vld [vmem:[%s2577_s30 + $0x200] sm:$0xff] }
 0x11f   : > { %1293 = vmatmul.mubr.bf16.gmra.mxu1 %v929_v40  ;;  %1109 = vmatprep.mubr.bf16.mxu0 %v932_v41  ;;  %v859_v40 = vld [vmem:[%s2577_s30 + $0x220] sm:$0xff]  ;;  %v857_v41 = vld [vmem:[%s2577_s30 + $0x210] sm:$0xff] }
 0x120   : > { %1302 = vmatprep.mubr.bf16.mxu1 %v934_v42  ;;  %v861_v42 = vld [vmem:[%s2577_s30 + $0x230] sm:$0xff]  ;;  %v951_v47 = vpack.c.bf16 %v859_v40, %v855_v39  ;;  %v904_v39 = vld [vmem:[%s2577_s30 + $0x388] sm:$0xff] }
 0x121   : > { %v953_v48 = vpack.c.bf16 %v861_v42, %v857_v41  ;;  %v908_v40 = vld [vmem:[%s2577_s30 + $0x3a8] sm:$0xff]  ;;  %v906_v41 = vld [vmem:[%s2577_s30 + $0x398] sm:$0xff] }
 0x122   : > { %v910_v42 = vld [vmem:[%s2577_s30 + $0x3b8] sm:$0xff]  ;;  %v976_v45 = vpack.c.bf16 %v908_v40, %v904_v39 }
 0x123   : > { %v978_v46 = vpack.c.bf16 %v910_v42, %v906_v41  ;;  %v735_v41 = vld [vmem:[#allocation2 + $0x180] sm:$0xff] }
 0x126   : > { %1110 = vmatmul.mubr.bf16.gmra.mxu0 %v931_v51  ;;  %v863_v51 = vld [vmem:[%s2577_s30 + $0x240] sm:$0xff] }
 0x127   : > { %1303 = vmatmul.mubr.bf16.gmra.mxu1 %v933_v52  ;;  %1119 = vmatprep.mubr.bf16.mxu0 %v936_v53  ;;  %v867_v52 = vld [vmem:[%s2577_s30 + $0x260] sm:$0xff]  ;;  %v865_v53 = vld [vmem:[%s2577_s30 + $0x250] sm:$0xff] }
 0x128   : > { %1312 = vmatprep.mubr.bf16.mxu1 %v938_v54  ;;  %v869_v54 = vld [vmem:[%s2577_s30 + $0x270] sm:$0xff]  ;;  %v955_v59 = vpack.c.bf16 %v867_v52, %v863_v51  ;;  %v912_v51 = vld [vmem:[%s2577_s30 + $0x3c8] sm:$0xff] }
 0x129   : > { %v957_v60 = vpack.c.bf16 %v869_v54, %v865_v53  ;;  %v916_v52 = vld [vmem:[%s2577_s30 + $0x3e8] sm:$0xff]  ;;  %v914_v53 = vld [vmem:[%s2577_s30 + $0x3d8] sm:$0xff] }
 0x12a   : > { %v918_v54 = vld [vmem:[%s2577_s30 + $0x3f8] sm:$0xff]  ;;  %v980_v57 = vpack.c.bf16 %v916_v52, %v912_v51 }
 0x12b   : > { %v982_v58 = vpack.c.bf16 %v918_v54, %v914_v53  ;;  %v737_v51 = vld [vmem:[#allocation2 + $0x118] sm:$0xff] }
 0x12e   : > { %1120 = vmatmul.mubr.bf16.gmra.mxu0 %v935_v63  ;;  %v871_v63 = vld [vmem:[%s2577_s30 + $0x280] sm:$0xff] }
 0x12f   : > { %1313 = vmatmul.mubr.bf16.gmra.mxu1 %v937_v0  ;;  %1129 = vmatprep.mubr.bf16.mxu0 %v940_v1  ;;  %v875_v0 = vld [vmem:[%s2577_s30 + $0x2a0] sm:$0xff]  ;;  %v873_v1 = vld [vmem:[%s2577_s30 + $0x290] sm:$0xff] }
 0x130   : > { %1322 = vmatprep.mubr.bf16.mxu1 %v942_v2  ;;  %v877_v2 = vld [vmem:[%s2577_s30 + $0x2b0] sm:$0xff]  ;;  %v959_v7 = vpack.c.bf16 %v875_v0, %v871_v63 }
 0x131   : > { %v961_v8 = vpack.c.bf16 %v877_v2, %v873_v1  ;;  %v727_v2 = vld [vmem:[#allocation2 + $0xb0] sm:$0xff] }
 0x136   : > { %1130 = vmatmul.mubr.bf16.gmra.mxu0 %v939_v11  ;;  %v879_v11 = vld [vmem:[%s2577_s30 + $0x2c0] sm:$0xff] }
 0x137   : > { %1323 = vmatmul.mubr.bf16.gmra.mxu1 %v941_v12  ;;  %1139 = vmatprep.mubr.bf16.mxu0 %v944_v13  ;;  %v883_v12 = vld [vmem:[%s2577_s30 + $0x2e0] sm:$0xff]  ;;  %v881_v13 = vld [vmem:[%s2577_s30 + $0x2d0] sm:$0xff] }
 0x138   : > { %1332 = vmatprep.mubr.bf16.mxu1 %v946_v14  ;;  %v885_v14 = vld [vmem:[%s2577_s30 + $0x2f0] sm:$0xff]  ;;  %v963_v19 = vpack.c.bf16 %v883_v12, %v879_v11  ;;  %v729_v11 = vld [vmem:[#allocation2 + $0xd8] sm:$0xff] }
 0x139   : > { %v965_v20 = vpack.c.bf16 %v885_v14, %v881_v13 }
 0x13e   : > { %1140 = vmatmul.mubr.bf16.gmra.mxu0 %v943_v23  ;;  %v887_v23 = vld [vmem:[%s2577_s30 + $0x300] sm:$0xff] }
 0x13f   : > { %1333 = vmatmul.mubr.bf16.gmra.mxu1 %v945_v24  ;;  %1149 = vmatprep.mubr.bf16.mxu0 %v948_v25  ;;  %v891_v24 = vld [vmem:[%s2577_s30 + $0x320] sm:$0xff]  ;;  %v889_v25 = vld [vmem:[%s2577_s30 + $0x310] sm:$0xff] }
 0x140   : > { %1342 = vmatprep.mubr.bf16.mxu1 %v950_v26  ;;  %v893_v26 = vld [vmem:[%s2577_s30 + $0x330] sm:$0xff]  ;;  %v967_v31 = vpack.c.bf16 %v891_v24, %v887_v23 }
 0x141   : > { %v969_v32 = vpack.c.bf16 %v893_v26, %v889_v25  ;;  %v732_v26 = vld [vmem:[#allocation2 + $0x168] sm:$0xff] }
 0x146   : > { %1150 = vmatmul.mubr.bf16.gmra.mxu0 %v947_v35  ;;  %v895_v35 = vld [vmem:[%s2577_s30 + $0x340] sm:$0xff] }
 0x147   : > { %1343 = vmatmul.mubr.bf16.gmra.mxu1 %v949_v36  ;;  %1159 = vmatprep.mubr.bf16.mxu0 %v952_v37  ;;  %v899_v36 = vld [vmem:[%s2577_s30 + $0x360] sm:$0xff]  ;;  %v897_v37 = vld [vmem:[%s2577_s30 + $0x350] sm:$0xff] }
 0x148   : > { %1352 = vmatprep.mubr.bf16.mxu1 %v954_v38  ;;  %v901_v38 = vld [vmem:[%s2577_s30 + $0x370] sm:$0xff]  ;;  %v971_v43 = vpack.c.bf16 %v899_v36, %v895_v35  ;;  %v734_v36 = vld [vmem:[#allocation2 + $0x48] sm:$0xff] }
 0x149   : > { %v973_v44 = vpack.c.bf16 %v901_v38, %v897_v37 }
 0x14e   : > { %1160 = vmatmul.mubr.bf16.gmra.mxu0 %v951_v47  ;;  %v903_v47 = vld [vmem:[%s2577_s30 + $0x380] sm:$0xff] }
 0x14f   : > { %1353 = vmatmul.mubr.bf16.gmra.mxu1 %v953_v48  ;;  %1169 = vmatprep.mubr.bf16.mxu0 %v956_v49  ;;  %v907_v48 = vld [vmem:[%s2577_s30 + $0x3a0] sm:$0xff]  ;;  %v905_v49 = vld [vmem:[%s2577_s30 + $0x390] sm:$0xff] }
 0x150   : > { %1362 = vmatprep.mubr.bf16.mxu1 %v958_v50  ;;  %v909_v50 = vld [vmem:[%s2577_s30 + $0x3b0] sm:$0xff]  ;;  %v975_v55 = vpack.c.bf16 %v907_v48, %v903_v47 }
 0x151   : > { %v977_v56 = vpack.c.bf16 %v909_v50, %v905_v49 }
 0x156   : > { %1170 = vmatmul.mubr.bf16.gmra.mxu0 %v955_v59  ;;  %v911_v59 = vld [vmem:[%s2577_s30 + $0x3c0] sm:$0xff] }
 0x157   : > { %1363 = vmatmul.mubr.bf16.gmra.mxu1 %v957_v60  ;;  %1179 = vmatprep.mubr.bf16.mxu0 %v960_v61  ;;  %v915_v60 = vld [vmem:[%s2577_s30 + $0x3e0] sm:$0xff]  ;;  %v913_v61 = vld [vmem:[%s2577_s30 + $0x3d0] sm:$0xff] }
 0x158   : > { %1372 = vmatprep.mubr.bf16.mxu1 %v962_v62  ;;  %v917_v62 = vld [vmem:[%s2577_s30 + $0x3f0] sm:$0xff]  ;;  %v979_v63 = vpack.c.bf16 %v915_v60, %v911_v59 }
 0x159   : > { %v981_v0 = vpack.c.bf16 %v917_v62, %v913_v61  ;;  %v739_v61 = vld [vmem:[#allocation2 + $0x120] sm:$0xff] }
 0x15e   : > { %1180 = vmatmul.mubr.bf16.gmra.mxu0 %v959_v7 }
 0x15f   : > { %1373 = vmatmul.mubr.bf16.gmra.mxu1 %v961_v8  ;;  %1189 = vmatprep.mubr.bf16.mxu0 %v964_v9 }
 0x160   : > { %1382 = vmatprep.mubr.bf16.mxu1 %v966_v10 }
 0x166   : > { %1190 = vmatmul.mubr.bf16.gmra.mxu0 %v963_v19 }
 0x167   : > { %1383 = vmatmul.mubr.bf16.gmra.mxu1 %v965_v20  ;;  %1199 = vmatprep.mubr.bf16.mxu0 %v968_v21  ;;  %v731_v21 = vld [vmem:[#allocation2 + $0x50] sm:$0xff] }
 0x168   : > { %1392 = vmatprep.mubr.bf16.mxu1 %v970_v22 }
 0x16e   : > { %1200 = vmatmul.mubr.bf16.gmra.mxu0 %v967_v31  ;;  %v733_v31 = vld [vmem:[#allocation2 + $0x130] sm:$0xff] }
 0x16f   : > { %1393 = vmatmul.mubr.bf16.gmra.mxu1 %v969_v32  ;;  %1209 = vmatprep.mubr.bf16.mxu0 %v972_v33 }
 0x170   : > { %1402 = vmatprep.mubr.bf16.mxu1 %v974_v34 }
 0x176   : > { %1210 = vmatmul.mubr.bf16.gmra.mxu0 %v971_v43 }
 0x177   : > { %1403 = vmatmul.mubr.bf16.gmra.mxu1 %v973_v44  ;;  %1219 = vmatprep.mubr.bf16.mxu0 %v976_v45 }
 0x178   : > { %1412 = vmatprep.mubr.bf16.mxu1 %v978_v46  ;;  %v736_v46 = vld [vmem:[#allocation2 + $0x110] sm:$0xff] }
 0x17e   : > { %1220 = vmatmul.mubr.bf16.gmra.mxu0 %v975_v55 }
 0x17f   : > { %1413 = vmatmul.mubr.bf16.gmra.mxu1 %v977_v56  ;;  %1229 = vmatprep.mubr.bf16.mxu0 %v980_v57  ;;  %v738_v56 = vld [vmem:[#allocation2 + $0x98] sm:$0xff] }
 0x180   : > { %1422 = vmatprep.mubr.bf16.mxu1 %v982_v58 }
 0x186   : > { %1230 = vmatmul.mubr.bf16.gmra.mxu0 %v979_v63 }
 0x187   : > { %1423 = vmatmul.mubr.bf16.gmra.mxu1 %v981_v0 }
 0x1ce   : > { %v1081_v1 = vpop.f32.mrf.mxu0 }
 0x1cf   : > { %v1274_v3 = vpop.f32.mrf.mxu1 }
 0x1d0   : > { %v1275_v4 = vadd.f32 %v1274_v3, %v1081_v1  ;;  %v1083_v5 = vpop.f32.mrf.mxu0 }
 0x1d1   : > { %v1276_v7 = vpop.f32.mrf.mxu1 }
 0x1d2   : > { %v1433_v8 = vadd.f32 %v1275_v4, %v727_v2  ;;  %v1277_v9 = vadd.f32 %v1276_v7, %v1083_v5  ;;  %v1085_v10 = vpop.f32.mrf.mxu0  ;;  %v740_v2 = vld [vmem:[#allocation2 + $0x150] sm:$0xff]  ;;  %v741_v7 = vld [vmem:[#allocation2 + $0x108] sm:$0xff] }
 0x1d3   : > { %v1278_v12 = vpop.f32.mrf.mxu1 }
 0x1d4   : > { %1497 = vst [vmem:[#allocation2 + $0xb0] sm:$0xff] %v1433_v8  ;;  %v1434_v13 = vadd.f32 %v1277_v9, %v728_v6  ;;  %v1279_v14 = vadd.f32 %v1278_v12, %v1085_v10  ;;  %v1087_v15 = vpop.f32.mrf.mxu0  ;;  %v742_v12 = vld [vmem:[#allocation2 + $0x60] sm:$0xff] }
 0x1d5   : > { %v1280_v17 = vpop.f32.mrf.mxu1 }
 0x1d6   : > { %1498 = vst [vmem:[#allocation2 + $0x1b0] sm:$0xff] %v1434_v13  ;;  %v1435_v18 = vadd.f32 %v1279_v14, %v729_v11  ;;  %v1281_v19 = vadd.f32 %v1280_v17, %v1087_v15  ;;  %v1091_v20 = vpop.f32.mrf.mxu0  ;;  %v743_v17 = vld [vmem:[#allocation2 + $0xe0] sm:$0xff] }
 0x1d7   : > { %v1284_v22 = vpop.f32.mrf.mxu1 }
 0x1d8   : > { %1499 = vst [vmem:[#allocation2 + $0xd8] sm:$0xff] %v1435_v18  ;;  %v1436_v23 = vadd.f32 %v1281_v19, %v730_v16  ;;  %v1285_v24 = vadd.f32 %v1284_v22, %v1091_v20  ;;  %v1093_v25 = vpop.f32.mrf.mxu0  ;;  %v744_v22 = vld [vmem:[#allocation2 + $0x188] sm:$0xff] }
 0x1d9   : > { %v1286_v27 = vpop.f32.mrf.mxu1 }
 0x1da   : > { %1500 = vst [vmem:[#allocation2 + $0x18] sm:$0xff] %v1436_v23  ;;  %v1437_v28 = vadd.f32 %v1285_v24, %v731_v21  ;;  %v1287_v29 = vadd.f32 %v1286_v27, %v1093_v25  ;;  %v1095_v30 = vpop.f32.mrf.mxu0  ;;  %v745_v27 = vld [vmem:[#allocation2 + $0x138] sm:$0xff] }
 0x1db   : > { %v1288_v32 = vpop.f32.mrf.mxu1 }
 0x1dc   : > { %1501 = vst [vmem:[#allocation2 + $0x50] sm:$0xff] %v1437_v28  ;;  %v1438_v33 = vadd.f32 %v1287_v29, %v732_v26  ;;  %v1289_v34 = vadd.f32 %v1288_v32, %v1095_v30  ;;  %v1097_v35 = vpop.f32.mrf.mxu0  ;;  %v746_v32 = vld [vmem:[#allocation2 + $0x140] sm:$0xff] }
 0x1dd   : > { %v1290_v37 = vpop.f32.mrf.mxu1 }
 0x1de   : > { %1502 = vst [vmem:[#allocation2 + $0x168] sm:$0xff] %v1438_v33  ;;  %v1439_v38 = vadd.f32 %v1289_v34, %v733_v31  ;;  %v1291_v39 = vadd.f32 %v1290_v37, %v1097_v35  ;;  %v1101_v40 = vpop.f32.mrf.mxu0  ;;  %v747_v37 = vld [vmem:[#allocation2 + $0x80] sm:$0xff] }
 0x1df   : > { %v1294_v42 = vpop.f32.mrf.mxu1 }
 0x1e0   : > { %1503 = vst [vmem:[#allocation2 + $0x130] sm:$0xff] %v1439_v38  ;;  %v1440_v43 = vadd.f32 %v1291_v39, %v734_v36  ;;  %v1295_v44 = vadd.f32 %v1294_v42, %v1101_v40  ;;  %v1103_v45 = vpop.f32.mrf.mxu0  ;;  %v748_v42 = vld [vmem:[#allocation2 + $0x1a8] sm:$0xff] }
 0x1e1   : > { %v1296_v47 = vpop.f32.mrf.mxu1 }
 0x1e2   : > { %1504 = vst [vmem:[#allocation2 + $0x48] sm:$0xff] %v1440_v43  ;;  %v1441_v48 = vadd.f32 %v1295_v44, %v735_v41  ;;  %v1297_v49 = vadd.f32 %v1296_v47, %v1103_v45  ;;  %v1105_v50 = vpop.f32.mrf.mxu0  ;;  %v749_v47 = vld [vmem:[#allocation2 + $0x1b8] sm:$0xff] }
 0x1e3   : > { %v1298_v52 = vpop.f32.mrf.mxu1 }
 0x1e4   : > { %1505 = vst [vmem:[#allocation2 + $0x180] sm:$0xff] %v1441_v48  ;;  %v1442_v53 = vadd.f32 %v1297_v49, %v736_v46  ;;  %v1299_v54 = vadd.f32 %v1298_v52, %v1105_v50  ;;  %v1107_v55 = vpop.f32.mrf.mxu0  ;;  %v750_v52 = vld [vmem:[#allocation2 + $0x28] sm:$0xff] }
 0x1e5   : > { %v1300_v57 = vpop.f32.mrf.mxu1 }
 0x1e6   : > { %1506 = vst [vmem:[#allocation2 + $0x110] sm:$0xff] %v1442_v53  ;;  %v1443_v58 = vadd.f32 %v1299_v54, %v737_v51  ;;  %v1301_v59 = vadd.f32 %v1300_v57, %v1107_v55  ;;  %v1111_v60 = vpop.f32.mrf.mxu0  ;;  %v751_v57 = vld [vmem:[#allocation2 + $0x1e8] sm:$0xff] }
 0x1e7   : > { %v1304_v62 = vpop.f32.mrf.mxu1 }
 0x1e8   : > { %1507 = vst [vmem:[#allocation2 + $0x118] sm:$0xff] %v1443_v58  ;;  %v1444_v63 = vadd.f32 %v1301_v59, %v738_v56  ;;  %v1305_v0 = vadd.f32 %v1304_v62, %v1111_v60  ;;  %v1113_v1 = vpop.f32.mrf.mxu0  ;;  %v752_v62 = vld [vmem:[#allocation2 + $0xf8] sm:$0xff] }
 0x1e9   : > { %v1306_v3 = vpop.f32.mrf.mxu1 }
 0x1ea   : > { %1508 = vst [vmem:[#allocation2 + $0x98] sm:$0xff] %v1444_v63  ;;  %v1445_v4 = vadd.f32 %v1305_v0, %v739_v61  ;;  %v1307_v5 = vadd.f32 %v1306_v3, %v1113_v1  ;;  %v1115_v6 = vpop.f32.mrf.mxu0  ;;  %v753_v3 = vld [vmem:[#allocation2 + $0x160] sm:$0xff] }
 0x1eb   : > { %v1308_v8 = vpop.f32.mrf.mxu1 }
 0x1ec   : > { %1509 = vst [vmem:[#allocation2 + $0x120] sm:$0xff] %v1445_v4  ;;  %v1446_v9 = vadd.f32 %v1307_v5, %v740_v2  ;;  %v1309_v10 = vadd.f32 %v1308_v8, %v1115_v6  ;;  %v1117_v11 = vpop.f32.mrf.mxu0  ;;  %v754_v8 = vld [vmem:[#allocation2 + $0x30] sm:$0xff] }
 0x1ed   : > { %v1310_v13 = vpop.f32.mrf.mxu1 }
 0x1ee   : > { %1510 = vst [vmem:[#allocation2 + $0x150] sm:$0xff] %v1446_v9  ;;  %v1447_v14 = vadd.f32 %v1309_v10, %v741_v7  ;;  %v1311_v15 = vadd.f32 %v1310_v13, %v1117_v11  ;;  %v1121_v16 = vpop.f32.mrf.mxu0  ;;  %v755_v13 = vld [vmem:[#allocation2 + $0x1e0] sm:$0xff] }
 0x1ef   : > { %v1314_v18 = vpop.f32.mrf.mxu1 }
 0x1f0   : > { %1511 = vst [vmem:[#allocation2 + $0x108] sm:$0xff] %v1447_v14  ;;  %v1448_v19 = vadd.f32 %v1311_v15, %v742_v12  ;;  %v1315_v20 = vadd.f32 %v1314_v18, %v1121_v16  ;;  %v1123_v21 = vpop.f32.mrf.mxu0  ;;  %v756_v18 = vld [vmem:[#allocation2] sm:$0xff] }
 0x1f1   : > { %v1316_v23 = vpop.f32.mrf.mxu1 }
 0x1f2   : > { %1512 = vst [vmem:[#allocation2 + $0x60] sm:$0xff] %v1448_v19  ;;  %v1449_v24 = vadd.f32 %v1315_v20, %v743_v17  ;;  %v1317_v25 = vadd.f32 %v1316_v23, %v1123_v21  ;;  %v1125_v26 = vpop.f32.mrf.mxu0  ;;  %v757_v23 = vld [vmem:[#allocation2 + $0xf0] sm:$0xff] }
 0x1f3   : > { %v1318_v28 = vpop.f32.mrf.mxu1 }
 0x1f4   : > { %1513 = vst [vmem:[#allocation2 + $0xe0] sm:$0xff] %v1449_v24  ;;  %v1450_v29 = vadd.f32 %v1317_v25, %v744_v22  ;;  %v1319_v30 = vadd.f32 %v1318_v28, %v1125_v26  ;;  %v1127_v31 = vpop.f32.mrf.mxu0  ;;  %v758_v28 = vld [vmem:[#allocation2 + $0x8] sm:$0xff] }
 0x1f5   : > { %v1320_v33 = vpop.f32.mrf.mxu1 }
 0x1f6   : > { %1514 = vst [vmem:[#allocation2 + $0x188] sm:$0xff] %v1450_v29  ;;  %v1451_v34 = vadd.f32 %v1319_v30, %v745_v27  ;;  %v1321_v35 = vadd.f32 %v1320_v33, %v1127_v31  ;;  %v1131_v36 = vpop.f32.mrf.mxu0  ;;  %v759_v33 = vld [vmem:[#allocation2 + $0x148] sm:$0xff] }
 0x1f7   : > { %v1324_v38 = vpop.f32.mrf.mxu1 }
 0x1f8   : > { %1515 = vst [vmem:[#allocation2 + $0x138] sm:$0xff] %v1451_v34  ;;  %v1452_v39 = vadd.f32 %v1321_v35, %v746_v32  ;;  %v1325_v40 = vadd.f32 %v1324_v38, %v1131_v36  ;;  %v1133_v41 = vpop.f32.mrf.mxu0  ;;  %v760_v38 = vld [vmem:[#allocation2 + $0x1d0] sm:$0xff] }
 0x1f9   : > { %v1326_v43 = vpop.f32.mrf.mxu1 }
 0x1fa   : > { %1516 = vst [vmem:[#allocation2 + $0x140] sm:$0xff] %v1452_v39  ;;  %v1453_v44 = vadd.f32 %v1325_v40, %v747_v37  ;;  %v1327_v45 = vadd.f32 %v1326_v43, %v1133_v41  ;;  %v1135_v46 = vpop.f32.mrf.mxu0  ;;  %v761_v43 = vld [vmem:[#allocation2 + $0x100] sm:$0xff] }
 0x1fb   : > { %v1328_v48 = vpop.f32.mrf.mxu1 }
 0x1fc   : > { %1517 = vst [vmem:[#allocation2 + $0x80] sm:$0xff] %v1453_v44  ;;  %v1454_v49 = vadd.f32 %v1327_v45, %v748_v42  ;;  %v1329_v50 = vadd.f32 %v1328_v48, %v1135_v46  ;;  %v1137_v51 = vpop.f32.mrf.mxu0  ;;  %v762_v48 = vld [vmem:[#allocation2 + $0xc8] sm:$0xff] }
 0x1fd   : > { %v1330_v53 = vpop.f32.mrf.mxu1 }
 0x1fe   : > { %1518 = vst [vmem:[#allocation2 + $0x1a8] sm:$0xff] %v1454_v49  ;;  %v1455_v54 = vadd.f32 %v1329_v50, %v749_v47  ;;  %v1331_v55 = vadd.f32 %v1330_v53, %v1137_v51  ;;  %v1141_v56 = vpop.f32.mrf.mxu0  ;;  %v763_v53 = vld [vmem:[#allocation2 + $0x40] sm:$0xff] }
 0x1ff   : > { %v1334_v58 = vpop.f32.mrf.mxu1 }
 0x200   : > { %1519 = vst [vmem:[#allocation2 + $0x1b8] sm:$0xff] %v1455_v54  ;;  %v1456_v59 = vadd.f32 %v1331_v55, %v750_v52  ;;  %v1335_v60 = vadd.f32 %v1334_v58, %v1141_v56  ;;  %v1143_v61 = vpop.f32.mrf.mxu0  ;;  %v764_v58 = vld [vmem:[#allocation2 + $0x1f8] sm:$0xff] }
 0x201   : > { %v1336_v63 = vpop.f32.mrf.mxu1 }
 0x202   : > { %1520 = vst [vmem:[#allocation2 + $0x28] sm:$0xff] %v1456_v59  ;;  %v1457_v0 = vadd.f32 %v1335_v60, %v751_v57  ;;  %v1337_v1 = vadd.f32 %v1336_v63, %v1143_v61  ;;  %v1145_v2 = vpop.f32.mrf.mxu0  ;;  %v765_v63 = vld [vmem:[#allocation2 + $0x20] sm:$0xff] }
 0x203   : > { %v1338_v4 = vpop.f32.mrf.mxu1 }
 0x204   : > { %1521 = vst [vmem:[#allocation2 + $0x1e8] sm:$0xff] %v1457_v0  ;;  %v1458_v5 = vadd.f32 %v1337_v1, %v752_v62  ;;  %v1339_v6 = vadd.f32 %v1338_v4, %v1145_v2  ;;  %v1147_v7 = vpop.f32.mrf.mxu0  ;;  %v766_v4 = vld [vmem:[#allocation2 + $0x128] sm:$0xff] }
 0x205   : > { %v1340_v9 = vpop.f32.mrf.mxu1 }
 0x206   : > { %1522 = vst [vmem:[#allocation2 + $0xf8] sm:$0xff] %v1458_v5  ;;  %v1459_v10 = vadd.f32 %v1339_v6, %v753_v3  ;;  %v1341_v11 = vadd.f32 %v1340_v9, %v1147_v7  ;;  %v1151_v12 = vpop.f32.mrf.mxu0  ;;  %v767_v9 = vld [vmem:[#allocation2 + $0x1a0] sm:$0xff] }
 0x207   : > { %v1344_v14 = vpop.f32.mrf.mxu1 }
 0x208   : > { %1523 = vst [vmem:[#allocation2 + $0x160] sm:$0xff] %v1459_v10  ;;  %v1460_v15 = vadd.f32 %v1341_v11, %v754_v8  ;;  %v1345_v16 = vadd.f32 %v1344_v14, %v1151_v12  ;;  %v1153_v17 = vpop.f32.mrf.mxu0  ;;  %v768_v14 = vld [vmem:[#allocation2 + $0x1f0] sm:$0xff] }
 0x209   : > { %v1346_v19 = vpop.f32.mrf.mxu1 }
 0x20a   : > { %1524 = vst [vmem:[#allocation2 + $0x30] sm:$0xff] %v1460_v15  ;;  %v1461_v20 = vadd.f32 %v1345_v16, %v755_v13  ;;  %v1347_v21 = vadd.f32 %v1346_v19, %v1153_v17  ;;  %v1155_v22 = vpop.f32.mrf.mxu0  ;;  %v769_v19 = vld [vmem:[#allocation2 + $0xe8] sm:$0xff] }
 0x20b   : > { %v1348_v24 = vpop.f32.mrf.mxu1 }
 0x20c   : > { %1525 = vst [vmem:[#allocation2 + $0x1e0] sm:$0xff] %v1461_v20  ;;  %v1462_v25 = vadd.f32 %v1347_v21, %v756_v18  ;;  %v1349_v26 = vadd.f32 %v1348_v24, %v1155_v22  ;;  %v1157_v27 = vpop.f32.mrf.mxu0  ;;  %v770_v24 = vld [vmem:[#allocation2 + $0x78] sm:$0xff] }
 0x20d   : > { %v1350_v29 = vpop.f32.mrf.mxu1 }
 0x20e   : > { %1526 = vst [vmem:[#allocation2] sm:$0xff] %v1462_v25  ;;  %v1463_v30 = vadd.f32 %v1349_v26, %v757_v23  ;;  %v1351_v31 = vadd.f32 %v1350_v29, %v1157_v27  ;;  %v1161_v32 = vpop.f32.mrf.mxu0  ;;  %v771_v29 = vld [vmem:[#allocation2 + $0x70] sm:$0xff] }
 0x20f   : > { %v1354_v34 = vpop.f32.mrf.mxu1 }
 0x210   : > { %1527 = vst [vmem:[#allocation2 + $0xf0] sm:$0xff] %v1463_v30  ;;  %v1464_v35 = vadd.f32 %v1351_v31, %v758_v28  ;;  %v1355_v36 = vadd.f32 %v1354_v34, %v1161_v32  ;;  %v1163_v37 = vpop.f32.mrf.mxu0  ;;  %v772_v34 = vld [vmem:[#allocation2 + $0x90] sm:$0xff] }
 0x211   : > { %v1356_v39 = vpop.f32.mrf.mxu1 }
 0x212   : > { %1528 = vst [vmem:[#allocation2 + $0x8] sm:$0xff] %v1464_v35  ;;  %v1465_v40 = vadd.f32 %v1355_v36, %v759_v33  ;;  %v1357_v41 = vadd.f32 %v1356_v39, %v1163_v37  ;;  %v1165_v42 = vpop.f32.mrf.mxu0  ;;  %v773_v39 = vld [vmem:[#allocation2 + $0x1d8] sm:$0xff] }
 0x213   : > { %v1358_v44 = vpop.f32.mrf.mxu1 }
 0x214   : > { %1529 = vst [vmem:[#allocation2 + $0x148] sm:$0xff] %v1465_v40  ;;  %v1466_v45 = vadd.f32 %v1357_v41, %v760_v38  ;;  %v1359_v46 = vadd.f32 %v1358_v44, %v1165_v42  ;;  %v1167_v47 = vpop.f32.mrf.mxu0  ;;  %v774_v44 = vld [vmem:[#allocation2 + $0xd0] sm:$0xff] }
 0x215   : > { %v1360_v49 = vpop.f32.mrf.mxu1 }
 0x216   : > { %1530 = vst [vmem:[#allocation2 + $0x1d0] sm:$0xff] %v1466_v45  ;;  %v1467_v50 = vadd.f32 %v1359_v46, %v761_v43  ;;  %v1361_v51 = vadd.f32 %v1360_v49, %v1167_v47  ;;  %v1171_v52 = vpop.f32.mrf.mxu0  ;;  %v775_v49 = vld [vmem:[#allocation2 + $0xb8] sm:$0xff] }
 0x217   : > { %v1364_v54 = vpop.f32.mrf.mxu1 }
 0x218   : > { %1531 = vst [vmem:[#allocation2 + $0x100] sm:$0xff] %v1467_v50  ;;  %v1468_v55 = vadd.f32 %v1361_v51, %v762_v48  ;;  %v1365_v56 = vadd.f32 %v1364_v54, %v1171_v52  ;;  %v1173_v57 = vpop.f32.mrf.mxu0  ;;  %v776_v54 = vld [vmem:[#allocation2 + $0x88] sm:$0xff] }
 0x219   : > { %v1366_v59 = vpop.f32.mrf.mxu1 }
 0x21a   : > { %1532 = vst [vmem:[#allocation2 + $0xc8] sm:$0xff] %v1468_v55  ;;  %v1469_v60 = vadd.f32 %v1365_v56, %v763_v53  ;;  %v1367_v61 = vadd.f32 %v1366_v59, %v1173_v57  ;;  %v1175_v62 = vpop.f32.mrf.mxu0  ;;  %v777_v59 = vld [vmem:[#allocation2 + $0xa8] sm:$0xff] }
 0x21b   : > { %v1368_v0 = vpop.f32.mrf.mxu1 }
 0x21c   : > { %1533 = vst [vmem:[#allocation2 + $0x40] sm:$0xff] %v1469_v60  ;;  %v1470_v1 = vadd.f32 %v1367_v61, %v764_v58  ;;  %v1369_v2 = vadd.f32 %v1368_v0, %v1175_v62  ;;  %v1177_v3 = vpop.f32.mrf.mxu0  ;;  %v778_v0 = vld [vmem:[#allocation2 + $0x1c8] sm:$0xff] }
 0x21d   : > { %v1370_v5 = vpop.f32.mrf.mxu1 }
 0x21e   : > { %1534 = vst [vmem:[#allocation2 + $0x1f8] sm:$0xff] %v1470_v1  ;;  %v1471_v6 = vadd.f32 %v1369_v2, %v765_v63  ;;  %v1371_v7 = vadd.f32 %v1370_v5, %v1177_v3  ;;  %v1181_v8 = vpop.f32.mrf.mxu0  ;;  %v779_v5 = vld [vmem:[#allocation2 + $0x170] sm:$0xff] }
 0x21f   : > { %v1374_v10 = vpop.f32.mrf.mxu1 }
 0x220   : > { %1535 = vst [vmem:[#allocation2 + $0x20] sm:$0xff] %v1471_v6  ;;  %v1472_v11 = vadd.f32 %v1371_v7, %v766_v4  ;;  %v1375_v12 = vadd.f32 %v1374_v10, %v1181_v8  ;;  %v1183_v13 = vpop.f32.mrf.mxu0  ;;  %v780_v10 = vld [vmem:[#allocation2 + $0x178] sm:$0xff] }
 0x221   : > { %v1376_v15 = vpop.f32.mrf.mxu1 }
 0x222   : > { %1536 = vst [vmem:[#allocation2 + $0x128] sm:$0xff] %v1472_v11  ;;  %v1473_v16 = vadd.f32 %v1375_v12, %v767_v9  ;;  %v1377_v17 = vadd.f32 %v1376_v15, %v1183_v13  ;;  %v1185_v18 = vpop.f32.mrf.mxu0  ;;  %v781_v15 = vld [vmem:[#allocation2 + $0x68] sm:$0xff] }
 0x223   : > { %v1378_v20 = vpop.f32.mrf.mxu1 }
 0x224   : > { %1537 = vst [vmem:[#allocation2 + $0x1a0] sm:$0xff] %v1473_v16  ;;  %v1474_v21 = vadd.f32 %v1377_v17, %v768_v14  ;;  %v1379_v22 = vadd.f32 %v1378_v20, %v1185_v18  ;;  %v1187_v23 = vpop.f32.mrf.mxu0  ;;  %v782_v20 = vld [vmem:[#allocation2 + $0x190] sm:$0xff] }
 0x225   : > { %v1380_v25 = vpop.f32.mrf.mxu1 }
 0x226   : > { %1538 = vst [vmem:[#allocation2 + $0x1f0] sm:$0xff] %v1474_v21  ;;  %v1475_v26 = vadd.f32 %v1379_v22, %v769_v19  ;;  %v1381_v27 = vadd.f32 %v1380_v25, %v1187_v23  ;;  %v1191_v28 = vpop.f32.mrf.mxu0  ;;  %v783_v25 = vld [vmem:[#allocation2 + $0x198] sm:$0xff] }
 0x227   : > { %v1384_v30 = vpop.f32.mrf.mxu1 }
 0x228   : > { %1539 = vst [vmem:[#allocation2 + $0xe8] sm:$0xff] %v1475_v26  ;;  %v1476_v31 = vadd.f32 %v1381_v27, %v770_v24  ;;  %v1385_v32 = vadd.f32 %v1384_v30, %v1191_v28  ;;  %v1193_v33 = vpop.f32.mrf.mxu0  ;;  %v784_v30 = vld [vmem:[#allocation2 + $0x38] sm:$0xff] }
 0x229   : > { %v1386_v35 = vpop.f32.mrf.mxu1 }
 0x22a   : > { %1540 = vst [vmem:[#allocation2 + $0x78] sm:$0xff] %v1476_v31  ;;  %v1477_v36 = vadd.f32 %v1385_v32, %v771_v29  ;;  %v1387_v37 = vadd.f32 %v1386_v35, %v1193_v33  ;;  %v1195_v38 = vpop.f32.mrf.mxu0  ;;  %v785_v35 = vld [vmem:[#allocation2 + $0xc0] sm:$0xff] }
 0x22b   : > { %v1388_v40 = vpop.f32.mrf.mxu1 }
 0x22c   : > { %1541 = vst [vmem:[#allocation2 + $0x70] sm:$0xff] %v1477_v36  ;;  %v1478_v41 = vadd.f32 %v1387_v37, %v772_v34  ;;  %v1389_v42 = vadd.f32 %v1388_v40, %v1195_v38  ;;  %v1197_v43 = vpop.f32.mrf.mxu0  ;;  %v786_v40 = vld [vmem:[#allocation2 + $0x1c0] sm:$0xff] }
 0x22d   : > { %v1390_v45 = vpop.f32.mrf.mxu1 }
 0x22e   : > { %1542 = vst [vmem:[#allocation2 + $0x90] sm:$0xff] %v1478_v41  ;;  %v1479_v46 = vadd.f32 %v1389_v42, %v773_v39  ;;  %v1391_v47 = vadd.f32 %v1390_v45, %v1197_v43  ;;  %v1201_v48 = vpop.f32.mrf.mxu0  ;;  %v787_v45 = vld [vmem:[#allocation2 + $0x158] sm:$0xff] }
 0x22f   : > { %v1394_v50 = vpop.f32.mrf.mxu1 }
 0x230   : > { %1543 = vst [vmem:[#allocation2 + $0x1d8] sm:$0xff] %v1479_v46  ;;  %v1480_v51 = vadd.f32 %v1391_v47, %v774_v44  ;;  %v1395_v52 = vadd.f32 %v1394_v50, %v1201_v48  ;;  %v1203_v53 = vpop.f32.mrf.mxu0  ;;  %v788_v50 = vld [vmem:[#allocation2 + $0x10] sm:$0xff] }
 0x231   : > { %v1396_v55 = vpop.f32.mrf.mxu1 }
 0x232   : > { %1544 = vst [vmem:[#allocation2 + $0xd0] sm:$0xff] %v1480_v51  ;;  %v1481_v56 = vadd.f32 %v1395_v52, %v775_v49  ;;  %v1397_v57 = vadd.f32 %v1396_v55, %v1203_v53  ;;  %v1205_v58 = vpop.f32.mrf.mxu0  ;;  %v789_v55 = vld [vmem:[#allocation2 + $0x58] sm:$0xff] }
 0x233   : > { %v1398_v60 = vpop.f32.mrf.mxu1 }
 0x234   : > { %1545 = vst [vmem:[#allocation2 + $0xb8] sm:$0xff] %v1481_v56  ;;  %v1482_v61 = vadd.f32 %v1397_v57, %v776_v54  ;;  %v1399_v62 = vadd.f32 %v1398_v60, %v1205_v58  ;;  %v1207_v63 = vpop.f32.mrf.mxu0  ;;  %v790_v60 = vld [vmem:[#allocation2 + $0xa0] sm:$0xff] }
 0x235   : > { %v1400_v1 = vpop.f32.mrf.mxu1 }
 0x236   : > { %1546 = vst [vmem:[#allocation2 + $0x88] sm:$0xff] %v1482_v61  ;;  %v1483_v2 = vadd.f32 %v1399_v62, %v777_v59  ;;  %v1401_v3 = vadd.f32 %v1400_v1, %v1207_v63  ;;  %v1211_v4 = vpop.f32.mrf.mxu0 }
 0x237   : > { %v1404_v6 = vpop.f32.mrf.mxu1 }
 0x238   : > { %1547 = vst [vmem:[#allocation2 + $0xa8] sm:$0xff] %v1483_v2  ;;  %v1484_v7 = vadd.f32 %v1401_v3, %v778_v0  ;;  %v1405_v8 = vadd.f32 %v1404_v6, %v1211_v4  ;;  %v1213_v9 = vpop.f32.mrf.mxu0 }
 0x239   : > { %v1406_v11 = vpop.f32.mrf.mxu1 }
 0x23a   : > { %1548 = vst [vmem:[#allocation2 + $0x1c8] sm:$0xff] %v1484_v7  ;;  %v1485_v12 = vadd.f32 %v1405_v8, %v779_v5  ;;  %v1407_v13 = vadd.f32 %v1406_v11, %v1213_v9  ;;  %v1215_v14 = vpop.f32.mrf.mxu0 }
 0x23b   : > { %v1408_v16 = vpop.f32.mrf.mxu1 }
 0x23c   : > { %1549 = vst [vmem:[#allocation2 + $0x170] sm:$0xff] %v1485_v12  ;;  %v1486_v17 = vadd.f32 %v1407_v13, %v780_v10  ;;  %v1409_v18 = vadd.f32 %v1408_v16, %v1215_v14  ;;  %v1217_v19 = vpop.f32.mrf.mxu0 }
 0x23d   : > { %v1410_v21 = vpop.f32.mrf.mxu1 }
 0x23e   : > { %1550 = vst [vmem:[#allocation2 + $0x178] sm:$0xff] %v1486_v17  ;;  %v1487_v22 = vadd.f32 %v1409_v18, %v781_v15  ;;  %v1411_v23 = vadd.f32 %v1410_v21, %v1217_v19  ;;  %v1221_v24 = vpop.f32.mrf.mxu0 }
 0x23f   : > { %v1414_v26 = vpop.f32.mrf.mxu1 }
 0x240   : > { %1551 = vst [vmem:[#allocation2 + $0x68] sm:$0xff] %v1487_v22  ;;  %v1488_v27 = vadd.f32 %v1411_v23, %v782_v20  ;;  %v1415_v28 = vadd.f32 %v1414_v26, %v1221_v24  ;;  %v1223_v29 = vpop.f32.mrf.mxu0 }
 0x241   : > { %v1416_v31 = vpop.f32.mrf.mxu1 }
 0x242   : > { %1552 = vst [vmem:[#allocation2 + $0x190] sm:$0xff] %v1488_v27  ;;  %v1489_v32 = vadd.f32 %v1415_v28, %v783_v25  ;;  %v1417_v33 = vadd.f32 %v1416_v31, %v1223_v29  ;;  %v1225_v34 = vpop.f32.mrf.mxu0 }
 0x243   : > { %v1418_v36 = vpop.f32.mrf.mxu1 }
 0x244   : > { %1553 = vst [vmem:[#allocation2 + $0x198] sm:$0xff] %v1489_v32  ;;  %v1490_v37 = vadd.f32 %v1417_v33, %v784_v30  ;;  %v1419_v38 = vadd.f32 %v1418_v36, %v1225_v34  ;;  %v1227_v39 = vpop.f32.mrf.mxu0 }
 0x245   : > { %v1420_v41 = vpop.f32.mrf.mxu1 }
 0x246   : > { %1554 = vst [vmem:[#allocation2 + $0x38] sm:$0xff] %v1490_v37  ;;  %v1491_v42 = vadd.f32 %v1419_v38, %v785_v35  ;;  %v1421_v43 = vadd.f32 %v1420_v41, %v1227_v39  ;;  %v1231_v44 = vpop.f32.mrf.mxu0 }
 0x247   : > { %v1424_v46 = vpop.f32.mrf.mxu1 }
 0x248   : > { %1555 = vst [vmem:[#allocation2 + $0xc0] sm:$0xff] %v1491_v42  ;;  %v1492_v47 = vadd.f32 %v1421_v43, %v786_v40  ;;  %v1425_v48 = vadd.f32 %v1424_v46, %v1231_v44  ;;  %v1233_v49 = vpop.f32.mrf.mxu0 }
 0x249   : > { %v1426_v51 = vpop.f32.mrf.mxu1 }
 0x24a   : > { %1556 = vst [vmem:[#allocation2 + $0x1c0] sm:$0xff] %v1492_v47  ;;  %v1493_v52 = vadd.f32 %v1425_v48, %v787_v45  ;;  %v1427_v53 = vadd.f32 %v1426_v51, %v1233_v49  ;;  %v1235_v54 = vpop.f32.mrf.mxu0 }
 0x24b   : > { %v1428_v56 = vpop.f32.mrf.mxu1 }
 0x24c   : > { %1557 = vst [vmem:[#allocation2 + $0x158] sm:$0xff] %v1493_v52  ;;  %v1494_v57 = vadd.f32 %v1427_v53, %v788_v50  ;;  %v1429_v58 = vadd.f32 %v1428_v56, %v1235_v54  ;;  %v1237_v59 = vpop.f32.mrf.mxu0 }
 0x24d   : > { %v1430_v61 = vpop.f32.mrf.mxu1 }
 0x24e   : > { %1558 = vst [vmem:[#allocation2 + $0x10] sm:$0xff] %v1494_v57  ;;  %v1495_v62 = vadd.f32 %v1429_v58, %v789_v55  ;;  %v1431_v63 = vadd.f32 %v1430_v61, %v1237_v59  ;;  %1564 = sbr.rel (%p2100_p12) target bundleno = 785 (0x311), region = 63 }
 0x250   : > { %1559 = vst [vmem:[#allocation2 + $0x58] sm:$0xff] %v1495_v62  ;;  %v1496_v0 = vadd.f32 %v1431_v63, %v790_v60 }
 0x252   : > { %1560 = vst [vmem:[#allocation2 + $0xa0] sm:$0xff] %v1496_v0 }
 0x253   : > { %v1631_v1 = vld [vmem:[%s2570_s26 + $0x10] sm:$0xff]  ;;  %v1629_v2 = vld [vmem:[%s2570_s26] sm:$0xff]  ;;  %v2222_v3 = vmov 0   ;;  %v1632_v4 = vld [vmem:[%s2570_s26 + $0x18] sm:$0xff] }
 0x254   : > { %2164 = vset.pattern.permute.xlu1 %v2222_v3  ;;  %2163 = vset.pattern.permute.xlu0 %v2222_v3  ;;  %v1630_v5 = vld [vmem:[%s2570_s26 + $0x8] sm:$0xff]  ;;  %v1633_v7 = vld [vmem:[%s2570_s26 + $0x20] sm:$0xff]  ;;  %v1636_v8 = vld [vmem:[%s2570_s26 + $0x38] sm:$0xff] }
 0x255   : > { %1673 = vperm.xlu1 %2164, %v1631_v1   ;;  %1663 = vperm.xlu0 %2163, %v1629_v2   ;;  %v1634_v6 = vld [vmem:[%s2570_s26 + $0x28] sm:$0xff]  ;;  %v1635_v9 = vld [vmem:[%s2570_s26 + $0x30] sm:$0xff]  ;;  %v1637_v11 = vld [vmem:[%s2570_s26 + $0x40] sm:$0xff] }
 0x256   : > { %v1638_v10 = vld [vmem:[%s2570_s26 + $0x48] sm:$0xff]  ;;  %v1640_v12 = vld [vmem:[%s2570_s26 + $0x58] sm:$0xff]  ;;  %v1639_v13 = vld [vmem:[%s2570_s26 + $0x50] sm:$0xff] }
 0x257   : > { %v1642_v14 = vld [vmem:[%s2570_s26 + $0x68] sm:$0xff]  ;;  %v1641_v15 = vld [vmem:[%s2570_s26 + $0x60] sm:$0xff]  ;;  %v1644_v16 = vld [vmem:[%s2570_s26 + $0x78] sm:$0xff] }
 0x258   : > { %v1643_v17 = vld [vmem:[%s2570_s26 + $0x70] sm:$0xff]  ;;  %v1646_v18 = vld [vmem:[%s2570_s26 + $0x88] sm:$0xff]  ;;  %v1645_v19 = vld [vmem:[%s2570_s26 + $0x80] sm:$0xff] }
 0x259   : > { %1678 = vperm.xlu1 %2164, %v1632_v4   ;;  %1668 = vperm.xlu0 %2163, %v1630_v5   ;;  %v1648_v20 = vld [vmem:[%s2570_s26 + $0x98] sm:$0xff]  ;;  %v1647_v21 = vld [vmem:[%s2570_s26 + $0x90] sm:$0xff]  ;;  %v1650_v22 = vld [vmem:[%s2570_s26 + $0xa8] sm:$0xff] }
 0x25a   : > { %v1649_v23 = vld [vmem:[%s2570_s26 + $0xa0] sm:$0xff]  ;;  %v1652_v24 = vld [vmem:[%s2570_s26 + $0xb8] sm:$0xff]  ;;  %v1651_v25 = vld [vmem:[%s2570_s26 + $0xb0] sm:$0xff] }
 0x25b   : > { %v1654_v26 = vld [vmem:[%s2570_s26 + $0xc8] sm:$0xff]  ;;  %v1653_v27 = vld [vmem:[%s2570_s26 + $0xc0] sm:$0xff]  ;;  %v1656_v28 = vld [vmem:[%s2570_s26 + $0xd8] sm:$0xff] }
 0x25c   : > { %v1655_v29 = vld [vmem:[%s2570_s26 + $0xd0] sm:$0xff]  ;;  %v1658_v30 = vld [vmem:[%s2570_s26 + $0xe8] sm:$0xff]  ;;  %v1657_v31 = vld [vmem:[%s2570_s26 + $0xe0] sm:$0xff] }
 0x25d   : > { %1688 = vperm.xlu1 %2164, %v1634_v6   ;;  %1683 = vperm.xlu0 %2163, %v1633_v7   ;;  %v1660_v32 = vld [vmem:[%s2570_s26 + $0xf8] sm:$0xff]  ;;  %v1659_v33 = vld [vmem:[%s2570_s26 + $0xf0] sm:$0xff]  ;;  %v1570_v35 = vld [vmem:[#allocation2 + $0x168] sm:$0xff] }
 0x25e   : > { %v1569_v34 = vld [vmem:[#allocation2 + $0x50] sm:$0xff]  ;;  %v1572_v45 = vld [vmem:[#allocation2 + $0x48] sm:$0xff]  ;;  %v1567_v46 = vld [vmem:[#allocation2 + $0xd8] sm:$0xff] }
 0x25f   : > { %v1565_v36 = vld [vmem:[#allocation2 + $0xb0] sm:$0xff]  ;;  %v1568_v47 = vld [vmem:[#allocation2 + $0x18] sm:$0xff]  ;;  %v1573_v56 = vld [vmem:[#allocation2 + $0x180] sm:$0xff] }
 0x260   : > { %v1566_v37 = vld [vmem:[#allocation2 + $0x1b0] sm:$0xff]  ;;  %v1575_v54 = vld [vmem:[#allocation2 + $0x118] sm:$0xff]  ;;  %v1579_v0 = vld [vmem:[#allocation2 + $0x108] sm:$0xff] }
 0x261   : > { %1698 = vperm.xlu1 %2164, %v1636_v8   ;;  %1693 = vperm.xlu0 %2163, %v1635_v9   ;;  %v1571_v44 = vld [vmem:[#allocation2 + $0x130] sm:$0xff]  ;;  %v1576_v55 = vld [vmem:[#allocation2 + $0x98] sm:$0xff]  ;;  %v1580_v1 = vld [vmem:[#allocation2 + $0x60] sm:$0xff] }
 0x262   : > { %v1574_v57 = vld [vmem:[#allocation2 + $0x110] sm:$0xff]  ;;  %v1577_v2 = vld [vmem:[#allocation2 + $0x120] sm:$0xff] }
 0x263   : > { %v1578_v3 = vld [vmem:[#allocation2 + $0x150] sm:$0xff] }
 0x265   : > { %1708 = vperm.xlu1 %2164, %v1638_v10   ;;  %1703 = vperm.xlu0 %2163, %v1637_v11   ;;  %v1583_v10 = vld [vmem:[#allocation2 + $0x138] sm:$0xff]  ;;  %v1584_v11 = vld [vmem:[#allocation2 + $0x140] sm:$0xff] }
 0x269   : > { %1718 = vperm.xlu1 %2164, %v1640_v12   ;;  %1713 = vperm.xlu0 %2163, %v1639_v13   ;;  %v1581_v12 = vld [vmem:[#allocation2 + $0xe0] sm:$0xff]  ;;  %v1582_v13 = vld [vmem:[#allocation2 + $0x188] sm:$0xff] }
 0x26d   : > { %1728 = vperm.xlu1 %2164, %v1642_v14   ;;  %1723 = vperm.xlu0 %2163, %v1641_v15  }
 0x271   : > { %1738 = vperm.xlu1 %2164, %v1644_v16   ;;  %1733 = vperm.xlu0 %2163, %v1643_v17  }
 0x275   : > { %1748 = vperm.xlu1 %2164, %v1646_v18   ;;  %1743 = vperm.xlu0 %2163, %v1645_v19  }
 0x279   : > { %1758 = vperm.xlu1 %2164, %v1648_v20   ;;  %1753 = vperm.xlu0 %2163, %v1647_v21   ;;  %v1587_v20 = vld [vmem:[#allocation2 + $0x1b8] sm:$0xff]  ;;  %v1588_v21 = vld [vmem:[#allocation2 + $0x28] sm:$0xff] }
 0x27d   : > { %1768 = vperm.xlu1 %2164, %v1650_v22   ;;  %1763 = vperm.xlu0 %2163, %v1649_v23   ;;  %v1585_v22 = vld [vmem:[#allocation2 + $0x80] sm:$0xff]  ;;  %v1586_v23 = vld [vmem:[#allocation2 + $0x1a8] sm:$0xff] }
 0x281   : > { %1778 = vperm.xlu1 %2164, %v1652_v24   ;;  %1773 = vperm.xlu0 %2163, %v1651_v25  }
 0x285   : > { %1788 = vperm.xlu1 %2164, %v1654_v26   ;;  %1783 = vperm.xlu0 %2163, %v1653_v27  }
 0x289   : > { %1798 = vperm.xlu1 %2164, %v1656_v28   ;;  %1793 = vperm.xlu0 %2163, %v1655_v29  }
 0x28d   : > { %1808 = vperm.xlu1 %2164, %v1658_v30   ;;  %1803 = vperm.xlu0 %2163, %v1657_v31   ;;  %v1591_v30 = vld [vmem:[#allocation2 + $0x160] sm:$0xff]  ;;  %v1592_v31 = vld [vmem:[#allocation2 + $0x30] sm:$0xff] }
 0x291   : > { %1818 = vperm.xlu1 %2164, %v1660_v32   ;;  %1813 = vperm.xlu0 %2163, %v1659_v33   ;;  %v1589_v32 = vld [vmem:[#allocation2 + $0x1e8] sm:$0xff]  ;;  %v1590_v33 = vld [vmem:[#allocation2 + $0xf8] sm:$0xff] }
 0x2d0   : > { %v1674_v38 = vpop.permute.xlu1 %1673  ;;  %v1664_v39 = vpop.permute.xlu0 %1663 }
 0x2d1   : > { %v1825_v40 = vadd.f32 %v1674_v38, %v1569_v34  ;;  %v1826_v41 = vadd.f32 %v1674_v38, %v1570_v35  ;;  %v1821_v42 = vadd.f32 %v1664_v39, %v1565_v36  ;;  %v1822_v43 = vadd.f32 %v1664_v39, %v1566_v37 }
 0x2d3   : > { %1889 = vst [vmem:[%s2575_s29 + $0x20] sm:$0xff] %v1825_v40  ;;  %1890 = vst [vmem:[%s2575_s29 + $0x28] sm:$0xff] %v1826_v41  ;;  %v1595_v40 = vld [vmem:[#allocation2 + $0xf0] sm:$0xff]  ;;  %v1596_v41 = vld [vmem:[#allocation2 + $0x8] sm:$0xff] }
 0x2d4   : > { %1885 = vst [vmem:[%s2575_s29] sm:$0xff] %v1821_v42  ;;  %1886 = vst [vmem:[%s2575_s29 + $0x8] sm:$0xff] %v1822_v43  ;;  %v1679_v48 = vpop.permute.xlu1 %1678  ;;  %v1669_v49 = vpop.permute.xlu0 %1668  ;;  %v1593_v42 = vld [vmem:[#allocation2 + $0x1e0] sm:$0xff] }
 0x2d5   : > { %v1827_v50 = vadd.f32 %v1679_v48, %v1571_v44  ;;  %v1828_v51 = vadd.f32 %v1679_v48, %v1572_v45  ;;  %v1823_v52 = vadd.f32 %v1669_v49, %v1567_v46  ;;  %v1824_v53 = vadd.f32 %v1669_v49, %v1568_v47  ;;  %v1594_v43 = vld [vmem:[#allocation2] sm:$0xff] }
 0x2d7   : > { %1891 = vst [vmem:[%s2575_s29 + $0x30] sm:$0xff] %v1827_v50  ;;  %1892 = vst [vmem:[%s2575_s29 + $0x38] sm:$0xff] %v1828_v51  ;;  %v1599_v50 = vld [vmem:[#allocation2 + $0x100] sm:$0xff]  ;;  %v1600_v51 = vld [vmem:[#allocation2 + $0xc8] sm:$0xff] }
 0x2d8   : > { %1887 = vst [vmem:[%s2575_s29 + $0x10] sm:$0xff] %v1823_v52  ;;  %1888 = vst [vmem:[%s2575_s29 + $0x18] sm:$0xff] %v1824_v53  ;;  %v1689_v58 = vpop.permute.xlu1 %1688  ;;  %v1684_v59 = vpop.permute.xlu0 %1683  ;;  %v1597_v52 = vld [vmem:[#allocation2 + $0x148] sm:$0xff]  ;;  %v1598_v53 = vld [vmem:[#allocation2 + $0x1d0] sm:$0xff] }
 0x2d9   : > { %v1831_v60 = vadd.f32 %v1689_v58, %v1575_v54  ;;  %v1832_v61 = vadd.f32 %v1689_v58, %v1576_v55  ;;  %v1829_v62 = vadd.f32 %v1684_v59, %v1573_v56  ;;  %v1830_v63 = vadd.f32 %v1684_v59, %v1574_v57 }
 0x2db   : > { %1895 = vst [vmem:[%s2575_s29 + $0x50] sm:$0xff] %v1831_v60  ;;  %1896 = vst [vmem:[%s2575_s29 + $0x58] sm:$0xff] %v1832_v61  ;;  %v1603_v60 = vld [vmem:[#allocation2 + $0x20] sm:$0xff]  ;;  %v1604_v61 = vld [vmem:[#allocation2 + $0x128] sm:$0xff] }
 0x2dc   : > { %1893 = vst [vmem:[%s2575_s29 + $0x40] sm:$0xff] %v1829_v62  ;;  %1894 = vst [vmem:[%s2575_s29 + $0x48] sm:$0xff] %v1830_v63  ;;  %v1699_v4 = vpop.permute.xlu1 %1698  ;;  %v1694_v5 = vpop.permute.xlu0 %1693  ;;  %v1601_v62 = vld [vmem:[#allocation2 + $0x40] sm:$0xff]  ;;  %v1602_v63 = vld [vmem:[#allocation2 + $0x1f8] sm:$0xff] }
 0x2dd   : > { %v1835_v6 = vadd.f32 %v1699_v4, %v1579_v0  ;;  %v1836_v7 = vadd.f32 %v1699_v4, %v1580_v1  ;;  %v1833_v8 = vadd.f32 %v1694_v5, %v1577_v2  ;;  %v1834_v9 = vadd.f32 %v1694_v5, %v1578_v3 }
 0x2df   : > { %1899 = vst [vmem:[%s2575_s29 + $0x70] sm:$0xff] %v1835_v6  ;;  %1900 = vst [vmem:[%s2575_s29 + $0x78] sm:$0xff] %v1836_v7  ;;  %v1607_v6 = vld [vmem:[#allocation2 + $0xe8] sm:$0xff]  ;;  %v1608_v7 = vld [vmem:[#allocation2 + $0x78] sm:$0xff] }
 0x2e0   : > { %1897 = vst [vmem:[%s2575_s29 + $0x60] sm:$0xff] %v1833_v8  ;;  %1898 = vst [vmem:[%s2575_s29 + $0x68] sm:$0xff] %v1834_v9  ;;  %v1709_v14 = vpop.permute.xlu1 %1708  ;;  %v1704_v15 = vpop.permute.xlu0 %1703  ;;  %v1605_v8 = vld [vmem:[#allocation2 + $0x1a0] sm:$0xff]  ;;  %v1606_v9 = vld [vmem:[#allocation2 + $0x1f0] sm:$0xff] }
 0x2e1   : > { %v1839_v16 = vadd.f32 %v1709_v14, %v1583_v10  ;;  %v1840_v17 = vadd.f32 %v1709_v14, %v1584_v11  ;;  %v1837_v18 = vadd.f32 %v1704_v15, %v1581_v12  ;;  %v1838_v19 = vadd.f32 %v1704_v15, %v1582_v13 }
 0x2e3   : > { %1903 = vst [vmem:[%s2575_s29 + $0x90] sm:$0xff] %v1839_v16  ;;  %1904 = vst [vmem:[%s2575_s29 + $0x98] sm:$0xff] %v1840_v17  ;;  %v1611_v16 = vld [vmem:[#allocation2 + $0x1d8] sm:$0xff]  ;;  %v1612_v17 = vld [vmem:[#allocation2 + $0xd0] sm:$0xff] }
 0x2e4   : > { %1901 = vst [vmem:[%s2575_s29 + $0x80] sm:$0xff] %v1837_v18  ;;  %1902 = vst [vmem:[%s2575_s29 + $0x88] sm:$0xff] %v1838_v19  ;;  %v1719_v24 = vpop.permute.xlu1 %1718  ;;  %v1714_v25 = vpop.permute.xlu0 %1713  ;;  %v1609_v18 = vld [vmem:[#allocation2 + $0x70] sm:$0xff] }
 0x2e5   : > { %v1843_v26 = vadd.f32 %v1719_v24, %v1587_v20  ;;  %v1844_v27 = vadd.f32 %v1719_v24, %v1588_v21  ;;  %v1841_v28 = vadd.f32 %v1714_v25, %v1585_v22  ;;  %v1842_v29 = vadd.f32 %v1714_v25, %v1586_v23  ;;  %v1610_v19 = vld [vmem:[#allocation2 + $0x90] sm:$0xff] }
 0x2e7   : > { %1907 = vst [vmem:[%s2575_s29 + $0xb0] sm:$0xff] %v1843_v26  ;;  %1908 = vst [vmem:[%s2575_s29 + $0xb8] sm:$0xff] %v1844_v27  ;;  %v1615_v26 = vld [vmem:[#allocation2 + $0xa8] sm:$0xff] }
 0x2e8   : > { %1905 = vst [vmem:[%s2575_s29 + $0xa0] sm:$0xff] %v1841_v28  ;;  %1906 = vst [vmem:[%s2575_s29 + $0xa8] sm:$0xff] %v1842_v29  ;;  %v1729_v34 = vpop.permute.xlu1 %1728  ;;  %v1724_v35 = vpop.permute.xlu0 %1723  ;;  %v1616_v27 = vld [vmem:[#allocation2 + $0x1c8] sm:$0xff]  ;;  %v1613_v28 = vld [vmem:[#allocation2 + $0xb8] sm:$0xff] }
 0x2e9   : > { %v1847_v36 = vadd.f32 %v1729_v34, %v1591_v30  ;;  %v1848_v37 = vadd.f32 %v1729_v34, %v1592_v31  ;;  %v1845_v38 = vadd.f32 %v1724_v35, %v1589_v32  ;;  %v1846_v39 = vadd.f32 %v1724_v35, %v1590_v33  ;;  %v1614_v29 = vld [vmem:[#allocation2 + $0x88] sm:$0xff] }
 0x2eb   : > { %1911 = vst [vmem:[%s2575_s29 + $0xd0] sm:$0xff] %v1847_v36  ;;  %1912 = vst [vmem:[%s2575_s29 + $0xd8] sm:$0xff] %v1848_v37  ;;  %v1619_v36 = vld [vmem:[#allocation2 + $0x68] sm:$0xff]  ;;  %v1620_v37 = vld [vmem:[#allocation2 + $0x190] sm:$0xff] }
 0x2ec   : > { %1909 = vst [vmem:[%s2575_s29 + $0xc0] sm:$0xff] %v1845_v38  ;;  %1910 = vst [vmem:[%s2575_s29 + $0xc8] sm:$0xff] %v1846_v39  ;;  %v1739_v44 = vpop.permute.xlu1 %1738  ;;  %v1734_v45 = vpop.permute.xlu0 %1733  ;;  %v1617_v38 = vld [vmem:[#allocation2 + $0x170] sm:$0xff]  ;;  %v1618_v39 = vld [vmem:[#allocation2 + $0x178] sm:$0xff] }
 0x2ed   : > { %v1851_v46 = vadd.f32 %v1739_v44, %v1595_v40  ;;  %v1852_v47 = vadd.f32 %v1739_v44, %v1596_v41  ;;  %v1849_v48 = vadd.f32 %v1734_v45, %v1593_v42  ;;  %v1850_v49 = vadd.f32 %v1734_v45, %v1594_v43 }
 0x2ef   : > { %1915 = vst [vmem:[%s2575_s29 + $0xf0] sm:$0xff] %v1851_v46  ;;  %1916 = vst [vmem:[%s2575_s29 + $0xf8] sm:$0xff] %v1852_v47  ;;  %v1623_v46 = vld [vmem:[#allocation2 + $0xc0] sm:$0xff] }
 0x2f0   : > { %1913 = vst [vmem:[%s2575_s29 + $0xe0] sm:$0xff] %v1849_v48  ;;  %1914 = vst [vmem:[%s2575_s29 + $0xe8] sm:$0xff] %v1850_v49  ;;  %v1749_v54 = vpop.permute.xlu1 %1748  ;;  %v1744_v55 = vpop.permute.xlu0 %1743  ;;  %v1624_v47 = vld [vmem:[#allocation2 + $0x1c0] sm:$0xff]  ;;  %v1621_v48 = vld [vmem:[#allocation2 + $0x198] sm:$0xff] }
 0x2f1   : > { %v1855_v56 = vadd.f32 %v1749_v54, %v1599_v50  ;;  %v1856_v57 = vadd.f32 %v1749_v54, %v1600_v51  ;;  %v1853_v58 = vadd.f32 %v1744_v55, %v1597_v52  ;;  %v1854_v59 = vadd.f32 %v1744_v55, %v1598_v53  ;;  %v1622_v49 = vld [vmem:[#allocation2 + $0x38] sm:$0xff] }
 0x2f3   : > { %1919 = vst [vmem:[%s2575_s29 + $0x110] sm:$0xff] %v1855_v56  ;;  %1920 = vst [vmem:[%s2575_s29 + $0x118] sm:$0xff] %v1856_v57  ;;  %v1627_v56 = vld [vmem:[#allocation2 + $0x58] sm:$0xff]  ;;  %v1628_v57 = vld [vmem:[#allocation2 + $0xa0] sm:$0xff] }
 0x2f4   : > { %1917 = vst [vmem:[%s2575_s29 + $0x100] sm:$0xff] %v1853_v58  ;;  %1918 = vst [vmem:[%s2575_s29 + $0x108] sm:$0xff] %v1854_v59  ;;  %v1759_v0 = vpop.permute.xlu1 %1758  ;;  %v1754_v1 = vpop.permute.xlu0 %1753  ;;  %v1625_v58 = vld [vmem:[#allocation2 + $0x158] sm:$0xff]  ;;  %v1626_v59 = vld [vmem:[#allocation2 + $0x10] sm:$0xff] }
 0x2f5   : > { %v1859_v2 = vadd.f32 %v1759_v0, %v1603_v60  ;;  %v1860_v3 = vadd.f32 %v1759_v0, %v1604_v61  ;;  %v1857_v4 = vadd.f32 %v1754_v1, %v1601_v62  ;;  %v1858_v5 = vadd.f32 %v1754_v1, %v1602_v63 }
 0x2f7   : > { %1923 = vst [vmem:[%s2575_s29 + $0x130] sm:$0xff] %v1859_v2  ;;  %1924 = vst [vmem:[%s2575_s29 + $0x138] sm:$0xff] %v1860_v3 }
 0x2f8   : > { %1921 = vst [vmem:[%s2575_s29 + $0x120] sm:$0xff] %v1857_v4  ;;  %1922 = vst [vmem:[%s2575_s29 + $0x128] sm:$0xff] %v1858_v5  ;;  %v1769_v10 = vpop.permute.xlu1 %1768  ;;  %v1764_v11 = vpop.permute.xlu0 %1763 }
 0x2f9   : > { %v1863_v12 = vadd.f32 %v1769_v10, %v1607_v6  ;;  %v1864_v13 = vadd.f32 %v1769_v10, %v1608_v7  ;;  %v1861_v14 = vadd.f32 %v1764_v11, %v1605_v8  ;;  %v1862_v15 = vadd.f32 %v1764_v11, %v1606_v9 }
 0x2fb   : > { %1927 = vst [vmem:[%s2575_s29 + $0x150] sm:$0xff] %v1863_v12  ;;  %1928 = vst [vmem:[%s2575_s29 + $0x158] sm:$0xff] %v1864_v13 }
 0x2fc   : > { %1925 = vst [vmem:[%s2575_s29 + $0x140] sm:$0xff] %v1861_v14  ;;  %1926 = vst [vmem:[%s2575_s29 + $0x148] sm:$0xff] %v1862_v15  ;;  %v1779_v20 = vpop.permute.xlu1 %1778  ;;  %v1774_v21 = vpop.permute.xlu0 %1773 }
 0x2fd   : > { %v1867_v22 = vadd.f32 %v1779_v20, %v1611_v16  ;;  %v1868_v23 = vadd.f32 %v1779_v20, %v1612_v17  ;;  %v1865_v24 = vadd.f32 %v1774_v21, %v1609_v18  ;;  %v1866_v25 = vadd.f32 %v1774_v21, %v1610_v19 }
 0x2ff   : > { %1931 = vst [vmem:[%s2575_s29 + $0x170] sm:$0xff] %v1867_v22  ;;  %1932 = vst [vmem:[%s2575_s29 + $0x178] sm:$0xff] %v1868_v23 }
 0x300   : > { %1929 = vst [vmem:[%s2575_s29 + $0x160] sm:$0xff] %v1865_v24  ;;  %1930 = vst [vmem:[%s2575_s29 + $0x168] sm:$0xff] %v1866_v25  ;;  %v1789_v30 = vpop.permute.xlu1 %1788  ;;  %v1784_v31 = vpop.permute.xlu0 %1783 }
 0x301   : > { %v1871_v32 = vadd.f32 %v1789_v30, %v1615_v26  ;;  %v1872_v33 = vadd.f32 %v1789_v30, %v1616_v27  ;;  %v1869_v34 = vadd.f32 %v1784_v31, %v1613_v28  ;;  %v1870_v35 = vadd.f32 %v1784_v31, %v1614_v29 }
 0x303   : > { %1935 = vst [vmem:[%s2575_s29 + $0x190] sm:$0xff] %v1871_v32  ;;  %1936 = vst [vmem:[%s2575_s29 + $0x198] sm:$0xff] %v1872_v33 }
 0x304   : > { %1933 = vst [vmem:[%s2575_s29 + $0x180] sm:$0xff] %v1869_v34  ;;  %1934 = vst [vmem:[%s2575_s29 + $0x188] sm:$0xff] %v1870_v35  ;;  %v1799_v40 = vpop.permute.xlu1 %1798  ;;  %v1794_v41 = vpop.permute.xlu0 %1793 }
 0x305   : > { %v1875_v42 = vadd.f32 %v1799_v40, %v1619_v36  ;;  %v1876_v43 = vadd.f32 %v1799_v40, %v1620_v37  ;;  %v1873_v44 = vadd.f32 %v1794_v41, %v1617_v38  ;;  %v1874_v45 = vadd.f32 %v1794_v41, %v1618_v39 }
 0x307   : > { %1939 = vst [vmem:[%s2575_s29 + $0x1b0] sm:$0xff] %v1875_v42  ;;  %1940 = vst [vmem:[%s2575_s29 + $0x1b8] sm:$0xff] %v1876_v43 }
 0x308   : > { %1937 = vst [vmem:[%s2575_s29 + $0x1a0] sm:$0xff] %v1873_v44  ;;  %1938 = vst [vmem:[%s2575_s29 + $0x1a8] sm:$0xff] %v1874_v45  ;;  %v1809_v50 = vpop.permute.xlu1 %1808  ;;  %v1804_v51 = vpop.permute.xlu0 %1803 }
 0x309   : > { %v1879_v52 = vadd.f32 %v1809_v50, %v1623_v46  ;;  %v1880_v53 = vadd.f32 %v1809_v50, %v1624_v47  ;;  %v1877_v54 = vadd.f32 %v1804_v51, %v1621_v48  ;;  %v1878_v55 = vadd.f32 %v1804_v51, %v1622_v49 }
 0x30b   : > { %1943 = vst [vmem:[%s2575_s29 + $0x1d0] sm:$0xff] %v1879_v52  ;;  %1944 = vst [vmem:[%s2575_s29 + $0x1d8] sm:$0xff] %v1880_v53 }
 0x30c   : > { %1941 = vst [vmem:[%s2575_s29 + $0x1c0] sm:$0xff] %v1877_v54  ;;  %1942 = vst [vmem:[%s2575_s29 + $0x1c8] sm:$0xff] %v1878_v55  ;;  %v1819_v60 = vpop.permute.xlu1 %1818  ;;  %v1814_v61 = vpop.permute.xlu0 %1813 }
 0x30d   : > { %v1883_v62 = vadd.f32 %v1819_v60, %v1627_v56  ;;  %v1884_v63 = vadd.f32 %v1819_v60, %v1628_v57  ;;  %v1881_v0 = vadd.f32 %v1814_v61, %v1625_v58  ;;  %v1882_v1 = vadd.f32 %v1814_v61, %v1626_v59 }
 0x30f   : > { %1947 = vst [vmem:[%s2575_s29 + $0x1f0] sm:$0xff] %v1883_v62  ;;  %1948 = vst [vmem:[%s2575_s29 + $0x1f8] sm:$0xff] %v1884_v63 }
 0x310   : > { %1945 = vst [vmem:[%s2575_s29 + $0x1e0] sm:$0xff] %v1881_v0  ;;  %1946 = vst [vmem:[%s2575_s29 + $0x1e8] sm:$0xff] %v1882_v1 }
 0x311 PF: > { %s13_s18 = sadd.s32 1, %s2219_s18   ;;  %s3028_s12 = smov %s2199_s13 }
 0x312   : > { %p10_p13 = scmp.ge.s32.totalorder %s13_s18, 10   ;;  %s3029_s13 = smov %s2294_s25 }
 0x313   : > { %s3030_s14 = smov %s2211_s16  ;;  %s3031_s15 = smov %s2215_s17 }
 0x314   : > { %s3032_s16 = smov %s3035_s19  ;;  %s3033_s17 = smov %s3039_s20 }
 0x315   :  { %12 = sbr.rel (!%p10_p13) target bundleno = 4 (0x4), region = 105 }

</bundles_post_ra>
